<compile_context>
chip_gen: v6e
topology: v6e:2x2x1
jax: 0.10.0
libtpu: 0.0.40
codegen_flags: <defaults>
</compile_context>

<pallas_src>
import jax
import jax.numpy as jnp
from jax.experimental import pallas as pl
from jax.experimental.pallas import tpu as pltpu

K_IN = 784
K_PAD = 896           # 7 * 128 — lane-aligned fc1 contraction
H1, H2, H3 = 512, 256, 128
N_OUT = 10
N_PAD = 128           # lane-dense output slab (slice [:, :10] in the wrapper)


def _round_up(n, m):
    return ((n + m - 1) // m) * m


# ----------------------------------------------------------------------------
# Pallas kernel: fused 4-layer MLP forward on one (TB, K_PAD) batch tile
# ----------------------------------------------------------------------------
def mlp_kernel(x_ref, w1_ref, b1_ref, w2_ref, b2_ref, w3_ref, b3_ref,
               w4_ref, b4_ref, o_ref):
    # fc1 + ReLU  (bf16 operands on the MXU, f32 accumulate, f32 bias/ReLU)
    h = jnp.dot(x_ref[...], w1_ref[...], preferred_element_type=jnp.float32)
    h = jnp.maximum(h + b1_ref[...], 0.0)
    # fc2 (TicketLinear: mask pre-folded into w2) + ReLU
    h = jnp.dot(h.astype(jnp.bfloat16), w2_ref[...],
                preferred_element_type=jnp.float32)
    h = jnp.maximum(h + b2_ref[...], 0.0)
    # fc3 (TicketLinear: mask pre-folded into w3) + ReLU
    h = jnp.dot(h.astype(jnp.bfloat16), w3_ref[...],
                preferred_element_type=jnp.float32)
    h = jnp.maximum(h + b3_ref[...], 0.0)
    # fc4 (zero-padded to 128 output lanes; no activation) -> unmasked store
    h = jnp.dot(h.astype(jnp.bfloat16), w4_ref[...],
                preferred_element_type=jnp.float32)
    o_ref[...] = h + b4_ref[...]


# ----------------------------------------------------------------------------
# JAX wrapper: flatten, pad, batch-tile, call the kernel, slice the logits
# ----------------------------------------------------------------------------
def simple_mlp_forward(x, params, *, tb=256):
    """x: (B, 1, 28, 28) f32 (NCHW). Returns (B, 10) f32 logits."""
    B = x.shape[0]
    x2d = x.reshape(B, -1).astype(jnp.float32)               # torch.flatten(x, 1)
    x2d = jnp.pad(x2d, ((0, 0), (0, K_PAD - K_IN)))          # K: 784 -> 896

    TB = min(tb, _round_up(B, 8))                            # sublane-aligned tile
    Bp = _round_up(B, TB)
    if Bp != B:
        x2d = jnp.pad(x2d, ((0, Bp - B), (0, 0)))
    xb = x2d.astype(jnp.bfloat16)

    w1, b1, w2, b2, w3, b3, w4, b4 = params
    grid = (Bp // TB,)

    flops = 2 * Bp * (K_PAD * H1 + H1 * H2 + H2 * H3 + H3 * N_PAD)
    bytes_accessed = (
        (K_PAD * H1 + H1 * H2 + H2 * H3 + H3 * N_PAD) * 2    # bf16 weights
        + (H1 + H2 + H3 + N_PAD) * 4                          # f32 biases
        + Bp * K_PAD * 2 + Bp * N_PAD * 4)                    # x in, logits out

    out = pl.pallas_call(
        mlp_kernel,
        out_shape=jax.ShapeDtypeStruct((Bp, N_PAD), jnp.float32),
        grid_spec=pltpu.PrefetchScalarGridSpec(
            num_scalar_prefetch=0,
            grid=grid,
            in_specs=[
                pl.BlockSpec((TB, K_PAD), lambda i: (i, 0)),   # x tile (pipelined)
                pl.BlockSpec((K_PAD, H1), lambda i: (0, 0)),   # w1 (resident)
                pl.BlockSpec((1, H1),     lambda i: (0, 0)),   # b1
                pl.BlockSpec((H1, H2),    lambda i: (0, 0)),   # w2
                pl.BlockSpec((1, H2),     lambda i: (0, 0)),   # b2
                pl.BlockSpec((H2, H3),    lambda i: (0, 0)),   # w3
                pl.BlockSpec((1, H3),     lambda i: (0, 0)),   # b3
                pl.BlockSpec((H3, N_PAD), lambda i: (0, 0)),   # w4 (padded)
                pl.BlockSpec((1, N_PAD),  lambda i: (0, 0)),   # b4 (padded)
            ],
            out_specs=pl.BlockSpec((TB, N_PAD), lambda i: (i, 0)),
        ),
        compiler_params=pltpu.CompilerParams(
            dimension_semantics=("parallel",),
            vmem_limit_bytes=32 * 1024 * 1024,
        ),
        cost_estimate=pl.CostEstimate(
            flops=flops, transcendentals=0, bytes_accessed=bytes_accessed),
    )(xb, w1, b1, w2, b2, w3, b3, w4, b4)

    return out[:B, :N_OUT]


# ----------------------------------------------------------------------------
# Deterministic parameter construction (mirrors nn.Linear default init shapes)
# ----------------------------------------------------------------------------
def _linear_params(key, fan_in, fan_out):
    """PyTorch-style uniform(-1/sqrt(fan_in), 1/sqrt(fan_in)) init.

    Returned weight is already transposed to (fan_in, fan_out) for x @ W.
    """
    kw, kb = jax.random.split(key)
    bound = 1.0 / jnp.sqrt(float(fan_in))
    w = jax.random.uniform(kw, (fan_in, fan_out), jnp.float32, -bound, bound)
    b = jax.random.uniform(kb, (1, fan_out), jnp.float32, -bound, bound)
    return w, b


def _ticket_mask(seed, fan_in, fan_out, keep_prob=0.5):
    # TODO(synk): TicketLinear's definition was not provided; modeled here as a
    # Linear whose weight is elementwise-masked by a fixed seeded binary
    # (lottery-ticket style) mask with 50% density, folded into the weight.
    mkey = jax.random.PRNGKey(seed)
    return jax.random.bernoulli(mkey, keep_prob, (fan_in, fan_out)).astype(jnp.float32)


def build_params(key):
    k1, k2, k3, k4 = jax.random.split(key, 4)
    w1, b1 = _linear_params(k1, K_IN, H1)                    # fc1
    w2, b2 = _linear_params(k2, H1, H2)                      # fc2 (TicketLinear seed=42)
    w2 = w2 * _ticket_mask(42, H1, H2)
    w3, b3 = _linear_params(k3, H2, H3)                      # fc3 (TicketLinear seed=50)
    w3 = w3 * _ticket_mask(50, H2, H3)
    w4, b4 = _linear_params(k4, H3, N_OUT)                   # fc4
    # Kernel layout: fc1 K padded to 896 (zeros), fc4 N padded to 128 (zeros);
    # weights stored bf16 for native MXU throughput, biases kept f32.
    w1p = jnp.pad(w1, ((0, K_PAD - K_IN), (0, 0))).astype(jnp.bfloat16)
    w2p = w2.astype(jnp.bfloat16)
    w3p = w3.astype(jnp.bfloat16)
    w4p = jnp.pad(w4, ((0, 0), (0, N_PAD - N_OUT))).astype(jnp.bfloat16)
    b4p = jnp.pad(b4, ((0, 0), (0, N_PAD - N_OUT)))
    return (w1p, b1, w2p, b2, w3p, b3, w4p, b4p)


# ----------------------------------------------------------------------------
# Reference (pure JAX, same bf16 arithmetic) for sanity check
# ----------------------------------------------------------------------------
def reference_forward(x, params):
    w1, b1, w2, b2, w3, b3, w4, b4 = params
    B = x.shape[0]
    h = x.reshape(B, -1).astype(jnp.float32)
    h = jnp.pad(h, ((0, 0), (0, K_PAD - K_IN))).astype(jnp.bfloat16)
    h = jnp.maximum(jnp.dot(h, w1, preferred_element_type=jnp.float32) + b1, 0.0)
    h = jnp.maximum(jnp.dot(h.astype(jnp.bfloat16), w2,
                            preferred_element_type=jnp.float32) + b2, 0.0)
    h = jnp.maximum(jnp.dot(h.astype(jnp.bfloat16), w3,
                            preferred_element_type=jnp.float32) + b3, 0.0)
    h = jnp.dot(h.astype(jnp.bfloat16), w4,
                preferred_element_type=jnp.float32) + b4
    return h[:, :N_OUT]


if __name__ == "__main__":
    root = jax.random.PRNGKey(0)
    kx, kp = jax.random.split(root)

    # Input consistent with fc1's 784 input features: (B, C, H, W) = (2, 1, 28, 28)
    x = jax.random.normal(kx, (2, 1, 28, 28), jnp.float32)
    params = build_params(kp)

    out = simple_mlp_forward(x, params)
    out = jax.block_until_ready(out)

    ref = reference_forward(x, params)
    assert out.shape == (2, 10), out.shape
    assert jnp.allclose(out, ref, atol=1e-2, rtol=1e-2), "mismatch vs reference"

    print("KERNEL_OK")
</pallas_src>

<mosaic_0001>
module attributes {stable_mosaic.version = 11 : i64} {
  func.func @mlp_kernel(%arg0: i32, %arg1: memref<8x896xbf16, #tpu.memory_space<vmem>>, %arg2: memref<896x512xbf16, #tpu.memory_space<vmem>>, %arg3: memref<1x512xf32, #tpu.memory_space<vmem>>, %arg4: memref<512x256xbf16, #tpu.memory_space<vmem>>, %arg5: memref<1x256xf32, #tpu.memory_space<vmem>>, %arg6: memref<256x128xbf16, #tpu.memory_space<vmem>>, %arg7: memref<1x128xf32, #tpu.memory_space<vmem>>, %arg8: memref<128x128xbf16, #tpu.memory_space<vmem>>, %arg9: memref<1x128xf32, #tpu.memory_space<vmem>>, %arg10: memref<8x128xf32, #tpu.memory_space<vmem>>) attributes {dimension_semantics = [#tpu.dimension_semantics<parallel>], iteration_bounds = array<i64: 1>, scalar_prefetch = 0 : i64, scratch_operands = 0 : i64, tpu.core_type = #tpu.core_type<tc>, window_params = [{transform_indices = @transform_0, window_bounds = array<i64: 8, 896>}, {pipeline_mode = #tpu.pipeline_mode<synchronous>, transform_indices = @transform_1, window_bounds = array<i64: 896, 512>}, {pipeline_mode = #tpu.pipeline_mode<synchronous>, transform_indices = @transform_2, window_bounds = array<i64: 1, 512>}, {pipeline_mode = #tpu.pipeline_mode<synchronous>, transform_indices = @transform_3, window_bounds = array<i64: 512, 256>}, {pipeline_mode = #tpu.pipeline_mode<synchronous>, transform_indices = @transform_4, window_bounds = array<i64: 1, 256>}, {pipeline_mode = #tpu.pipeline_mode<synchronous>, transform_indices = @transform_5, window_bounds = array<i64: 256, 128>}, {pipeline_mode = #tpu.pipeline_mode<synchronous>, transform_indices = @transform_6, window_bounds = array<i64: 1, 128>}, {pipeline_mode = #tpu.pipeline_mode<synchronous>, transform_indices = @transform_7, window_bounds = array<i64: 128, 128>}, {pipeline_mode = #tpu.pipeline_mode<synchronous>, transform_indices = @transform_8, window_bounds = array<i64: 1, 128>}, {transform_indices = @transform_9, window_bounds = array<i64: 8, 128>}]} {
    %c0 = arith.constant 0 : index
    %c0_0 = arith.constant 0 : index
    %0 = vector.load %arg1[%c0, %c0_0] : memref<8x896xbf16, #tpu.memory_space<vmem>>, vector<8x896xbf16>
    %c0_1 = arith.constant 0 : index
    %c0_2 = arith.constant 0 : index
    %1 = vector.load %arg2[%c0_1, %c0_2] : memref<896x512xbf16, #tpu.memory_space<vmem>>, vector<896x512xbf16>
    %cst = arith.constant dense<0.000000e+00> : vector<8x512xf32>
    %2 = tpu.matmul %0, %1, %cst {dimension_numbers = #tpu.dot_dimension_numbers<[1], [0], [0], [1], [0, 0, 1, 1], [], []>} : vector<8x896xbf16>, vector<896x512xbf16>, vector<8x512xf32> -> vector<8x512xf32>
    %c0_3 = arith.constant 0 : index
    %c0_4 = arith.constant 0 : index
    %3 = vector.load %arg3[%c0_3, %c0_4] : memref<1x512xf32, #tpu.memory_space<vmem>>, vector<1x512xf32>
    %4 = vector.broadcast %3 : vector<1x512xf32> to vector<8x512xf32>
    %5 = arith.addf %2, %4 : vector<8x512xf32>
    %cst_5 = arith.constant 0.000000e+00 : f32
    %6 = vector.broadcast %cst_5 : f32 to vector<8x512xf32>
    %7 = arith.maximumf %5, %6 : vector<8x512xf32>
    %8 = arith.truncf %7 : vector<8x512xf32> to vector<8x512xbf16>
    %c0_6 = arith.constant 0 : index
    %c0_7 = arith.constant 0 : index
    %9 = vector.load %arg4[%c0_6, %c0_7] : memref<512x256xbf16, #tpu.memory_space<vmem>>, vector<512x256xbf16>
    %cst_8 = arith.constant dense<0.000000e+00> : vector<8x256xf32>
    %10 = tpu.matmul %8, %9, %cst_8 {dimension_numbers = #tpu.dot_dimension_numbers<[1], [0], [0], [1], [0, 0, 1, 1], [], []>} : vector<8x512xbf16>, vector<512x256xbf16>, vector<8x256xf32> -> vector<8x256xf32>
    %c0_9 = arith.constant 0 : index
    %c0_10 = arith.constant 0 : index
    %11 = vector.load %arg5[%c0_9, %c0_10] : memref<1x256xf32, #tpu.memory_space<vmem>>, vector<1x256xf32>
    %12 = vector.broadcast %11 : vector<1x256xf32> to vector<8x256xf32>
    %13 = arith.addf %10, %12 : vector<8x256xf32>
    %cst_11 = arith.constant 0.000000e+00 : f32
    %14 = vector.broadcast %cst_11 : f32 to vector<8x256xf32>
    %15 = arith.maximumf %13, %14 : vector<8x256xf32>
    %16 = arith.truncf %15 : vector<8x256xf32> to vector<8x256xbf16>
    %c0_12 = arith.constant 0 : index
    %c0_13 = arith.constant 0 : index
    %17 = vector.load %arg6[%c0_12, %c0_13] : memref<256x128xbf16, #tpu.memory_space<vmem>>, vector<256x128xbf16>
    %cst_14 = arith.constant dense<0.000000e+00> : vector<8x128xf32>
    %18 = tpu.matmul %16, %17, %cst_14 {dimension_numbers = #tpu.dot_dimension_numbers<[1], [0], [0], [1], [0, 0, 1, 1], [], []>} : vector<8x256xbf16>, vector<256x128xbf16>, vector<8x128xf32> -> vector<8x128xf32>
    %c0_15 = arith.constant 0 : index
    %c0_16 = arith.constant 0 : index
    %19 = vector.load %arg7[%c0_15, %c0_16] : memref<1x128xf32, #tpu.memory_space<vmem>>, vector<1x128xf32>
    %20 = vector.broadcast %19 : vector<1x128xf32> to vector<8x128xf32>
    %21 = arith.addf %18, %20 : vector<8x128xf32>
    %cst_17 = arith.constant 0.000000e+00 : f32
    %22 = vector.broadcast %cst_17 : f32 to vector<8x128xf32>
    %23 = arith.maximumf %21, %22 : vector<8x128xf32>
    %24 = arith.truncf %23 : vector<8x128xf32> to vector<8x128xbf16>
    %c0_18 = arith.constant 0 : index
    %c0_19 = arith.constant 0 : index
    %25 = vector.load %arg8[%c0_18, %c0_19] : memref<128x128xbf16, #tpu.memory_space<vmem>>, vector<128x128xbf16>
    %cst_20 = arith.constant dense<0.000000e+00> : vector<8x128xf32>
    %26 = tpu.matmul %24, %25, %cst_20 {dimension_numbers = #tpu.dot_dimension_numbers<[1], [0], [0], [1], [0, 0, 1, 1], [], []>} : vector<8x128xbf16>, vector<128x128xbf16>, vector<8x128xf32> -> vector<8x128xf32>
    %c0_21 = arith.constant 0 : index
    %c0_22 = arith.constant 0 : index
    %27 = vector.load %arg9[%c0_21, %c0_22] : memref<1x128xf32, #tpu.memory_space<vmem>>, vector<1x128xf32>
    %28 = vector.broadcast %27 : vector<1x128xf32> to vector<8x128xf32>
    %29 = arith.addf %26, %28 : vector<8x128xf32>
    %c0_23 = arith.constant 0 : index
    %c0_24 = arith.constant 0 : index
    %30 = vector.load %arg10[%c0_23, %c0_24] : memref<8x128xf32, #tpu.memory_space<vmem>>, vector<8x128xf32>
    tpu.vector_store %arg10[%c0_23, %c0_24], %29 {strides = array<i32>} : memref<8x128xf32, #tpu.memory_space<vmem>>, vector<8x128xf32>,
    return
  }
  func.func @transform_0(%arg0: i32) -> (i32, i32) {
    %c0_i32 = arith.constant 0 : i32
    %c0_i32_0 = arith.constant 0 : i32
    return %arg0, %c0_i32 : i32, i32
  }
  func.func @transform_1(%arg0: i32) -> (i32, i32) {
    %c0_i32 = arith.constant 0 : i32
    %c0_i32_0 = arith.constant 0 : i32
    %c0_i32_1 = arith.constant 0 : i32
    return %c0_i32, %c0_i32_0 : i32, i32
  }
  func.func @transform_2(%arg0: i32) -> (i32, i32) {
    %c0_i32 = arith.constant 0 : i32
    %c0_i32_0 = arith.constant 0 : i32
    %c0_i32_1 = arith.constant 0 : i32
    return %c0_i32, %c0_i32_0 : i32, i32
  }
  func.func @transform_3(%arg0: i32) -> (i32, i32) {
    %c0_i32 = arith.constant 0 : i32
    %c0_i32_0 = arith.constant 0 : i32
    %c0_i32_1 = arith.constant 0 : i32
    return %c0_i32, %c0_i32_0 : i32, i32
  }
  func.func @transform_4(%arg0: i32) -> (i32, i32) {
    %c0_i32 = arith.constant 0 : i32
    %c0_i32_0 = arith.constant 0 : i32
    %c0_i32_1 = arith.constant 0 : i32
    return %c0_i32, %c0_i32_0 : i32, i32
  }
  func.func @transform_5(%arg0: i32) -> (i32, i32) {
    %c0_i32 = arith.constant 0 : i32
    %c0_i32_0 = arith.constant 0 : i32
    %c0_i32_1 = arith.constant 0 : i32
    return %c0_i32, %c0_i32_0 : i32, i32
  }
  func.func @transform_6(%arg0: i32) -> (i32, i32) {
    %c0_i32 = arith.constant 0 : i32
    %c0_i32_0 = arith.constant 0 : i32
    %c0_i32_1 = arith.constant 0 : i32
    return %c0_i32, %c0_i32_0 : i32, i32
  }
  func.func @transform_7(%arg0: i32) -> (i32, i32) {
    %c0_i32 = arith.constant 0 : i32
    %c0_i32_0 = arith.constant 0 : i32
    %c0_i32_1 = arith.constant 0 : i32
    return %c0_i32, %c0_i32_0 : i32, i32
  }
  func.func @transform_8(%arg0: i32) -> (i32, i32) {
    %c0_i32 = arith.constant 0 : i32
    %c0_i32_0 = arith.constant 0 : i32
    %c0_i32_1 = arith.constant 0 : i32
    return %c0_i32, %c0_i32_0 : i32, i32
  }
  func.func @transform_9(%arg0: i32) -> (i32, i32) {
    %c0_i32 = arith.constant 0 : i32
    %c0_i32_0 = arith.constant 0 : i32
    return %arg0, %c0_i32 : i32, i32
  }
}

</mosaic_0001>

<bundles_post_ra>
// kernel: tpu_custom_call.1
= control target key start
LH: loop header
LB: loop body
LE: loop exit
PB: predicated region body
PF: predicated region fallthrough
CT: control target
= control target key end

     0   :  { %14 = vsyncpa [#allocation3], 0  ;;  %s3791_s0 = inlined_call_operand.hbm [shape: bf16[8,896], index: 0, kind: input, shape index: {}]   ;;  %s3792_s1 = inlined_call_operand.hbm [shape: bf16[896,512], index: 1, kind: input, shape index: {}]   ;;  %s3793_s2 = inlined_call_operand.hbm [shape: f32[1,512], index: 2, kind: input, shape index: {}]   ;;  %s3794_s3 = inlined_call_operand.hbm [shape: bf16[512,256], index: 3, kind: input, shape index: {}]   ;;  %s3795_s4 = inlined_call_operand.vmem [shape: f32[1,256], index: 4, kind: input, shape index: {}]   ;;  %s3796_s5 = inlined_call_operand.hbm [shape: bf16[256,128], index: 5, kind: input, shape index: {}]   ;;  %s3797_s6 = inlined_call_operand.vmem [shape: f32[1,128], index: 6, kind: input, shape index: {}]   ;;  %s3798_s7 = inlined_call_operand.hbm [shape: bf16[128,128], index: 7, kind: input, shape index: {}]   ;;  %s3799_s8 = inlined_call_operand.vmem [shape: f32[1,128], index: 8, kind: input, shape index: {}]   ;;  %s3800_s9 = inlined_call_operand.hbm [shape: f32[8,128], index: 9, kind: output, shape index: {}]  }
   0x1   :  { %15 = vsyncpa [#allocation6], 0 }
   0x2   :  { %16 = vsyncpa [#allocation9], 0 }
   0x3   :  { %17 = vsyncpa [#allocation12], 0 }
   0x4   :  { %18 = vsyncpa [#allocation4], 0  ;;  %s3633_s30 = smov [#allocation5]  }
   0x5   :  { %s34_s10 = sshll.u32 %s3633_s30, 4  ;;  %s35_s10 = int_to_ptr.vmem [resolvable:$true] %s34_s10 }
   0x6   :  { %s3491_s11 = scalar_lea.vmem %s35_s10, 28672  ;;  %p3496_p1 = scmp.lt.s32.totalorder %s35_s10, %s35_s10 }
   0x7   :  { %p3492_p0 = scmp.ne.s32.totalorder %s35_s10, %s3491_s11  ;;  %p3497_p2 = scmp.lt.s32.totalorder %s3491_s11, %s3491_s11 }
   0x9   :  { %p3498_p3 = por %p3497_p2, %p3496_p1 }
   0xb   :  { %p3499_p4 = pnand %p3498_p3, %p3492_p0 }
   0xd   :  { %3502 = shalt.err (!%p3499_p4)
}
   0xe   :  { %s3634_s12 = smov 256   ;;  %s3635_s13 = smov 16  }
   0xf   :  { %40 = dma.hbm_to_vmem [thread:$0]  %s3792_s1, 28672, %s35_s10, [#allocation6], %s3634_s12, %s3634_s12, %s3635_s13  }
  0x10   :  { %s3636_s16 = smov [#allocation8]  }
  0x11   :  { %s56_s17 = sshll.u32 %s3636_s16, 4  ;;  %s57_s17 = int_to_ptr.vmem [resolvable:$true] %s56_s17 }
  0x12   :  { %s3511_s18 = scalar_lea.vmem %s57_s17, 8192  ;;  %p3516_p6 = scmp.lt.s32.totalorder %s57_s17, %s57_s17 }
  0x13   :  { %p3512_p5 = scmp.ne.s32.totalorder %s57_s17, %s3511_s18  ;;  %p3517_p7 = scmp.lt.s32.totalorder %s3511_s18, %s3511_s18 }
  0x15   :  { %p3518_p8 = por %p3517_p7, %p3516_p6 }
  0x17   :  { %p3519_p9 = pnand %p3518_p8, %p3512_p5 }
  0x19   :  { %3522 = shalt.err (!%p3519_p9)
}
  0x1a   :  { %s3637_s19 = smov 128   ;;  %s3638_s20 = smov 8  }
  0x1b   :  { %62 = dma.hbm_to_vmem [thread:$0]  %s3794_s3, 8192, %s57_s17, [#allocation9], %s3637_s19, %s3637_s19, %s3638_s20  }
  0x1c   :  { %s3639_s23 = smov [#allocation2]   ;;  %s3640_s25 = smov [#allocation7]  }
  0x1d   :  { %s25_s24 = sshll.u32 %s3639_s23, 4  ;;  %s47_s1 = sshll.u32 %s3640_s25, 4  ;;  %s26_s24 = int_to_ptr.vmem [resolvable:$true] %s25_s24  ;;  %s48_s1 = int_to_ptr.vmem [resolvable:$true] %s47_s1 }
  0x1e   :  { %s3531_s26 = scalar_lea.vmem %s26_s24, 448  ;;  %p3536_p11 = scmp.lt.s32.totalorder %s26_s24, %s26_s24 }
  0x1f   :  { %p3532_p10 = scmp.ne.s32.totalorder %s26_s24, %s3531_s26  ;;  %p3537_p12 = scmp.lt.s32.totalorder %s3531_s26, %s3531_s26 }
  0x21   :  { %p3538_p13 = por %p3537_p12, %p3536_p11 }
  0x23   :  { %p3539_p0 = pnand %p3538_p13, %p3532_p10 }
  0x25   :  { %3542 = shalt.err (!%p3539_p0)
}
  0x26   :  { %28 = dma.hbm_to_vmem [thread:$0]  %s3791_s0, 448, %s26_s24, [#allocation3]  }
  0x27   :  { %s3551_s29 = scalar_lea.vmem %s48_s1, 64  ;;  %p3556_p2 = scmp.lt.s32.totalorder %s48_s1, %s48_s1 }
  0x28   :  { %p3552_p1 = scmp.ne.s32.totalorder %s48_s1, %s3551_s29  ;;  %p3557_p3 = scmp.lt.s32.totalorder %s3551_s29, %s3551_s29 }
  0x2a   :  { %p3558_p4 = por %p3557_p3, %p3556_p2 }
  0x2c   :  { %p3559_p5 = pnand %p3558_p4, %p3552_p1 }
  0x2e   :  { %3562 = shalt.err (!%p3559_p5)
}
  0x2f   :  { %50 = dma.hbm_to_vmem [thread:$0]  %s3793_s2, 64, %s48_s1, [#allocation6]  }
  0x30   :  { %s3641_s10 = smov [#allocation10]  }
  0x31   :  { %s70_s11 = sshll.u32 %s3641_s10, 4  ;;  %s71_s11 = int_to_ptr.vmem [resolvable:$true] %s70_s11 }
  0x32   :  { %s3571_s12 = scalar_lea.vmem %s71_s11, 2048  ;;  %p3576_p7 = scmp.lt.s32.totalorder %s71_s11, %s71_s11 }
  0x33   :  { %p3572_p6 = scmp.ne.s32.totalorder %s71_s11, %s3571_s12  ;;  %p3577_p8 = scmp.lt.s32.totalorder %s3571_s12, %s3571_s12 }
  0x35   :  { %p3578_p9 = por %p3577_p8, %p3576_p7 }
  0x37   :  { %p3579_p10 = pnand %p3578_p9, %p3572_p6 }
  0x39   :  { %3582 = shalt.err (!%p3579_p10)
}
  0x3a   :  { %s3642_s0 = smov 64   ;;  %s3643_s13 = smov 4  }
  0x3b   :  { %76 = dma.hbm_to_vmem [thread:$0]  %s3796_s5, 2048, %s71_s11, [#allocation9], %s3642_s0, %s3642_s0, %s3643_s13  }
  0x3c   :  { %s3644_s16 = smov [#allocation11]  }
  0x3d   :  { %s84_s17 = sshll.u32 %s3644_s16, 4  ;;  %s85_s17 = int_to_ptr.vmem [resolvable:$true] %s84_s17 }
  0x3e   :  { %s3591_s2 = scalar_lea.vmem %s85_s17, 1024  ;;  %p3596_p12 = scmp.lt.s32.totalorder %s85_s17, %s85_s17 }
  0x3f   :  { %p3592_p11 = scmp.ne.s32.totalorder %s85_s17, %s3591_s2  ;;  %p3597_p13 = scmp.lt.s32.totalorder %s3591_s2, %s3591_s2 }
  0x41   :  { %p3598_p0 = por %p3597_p13, %p3596_p12 }
  0x43   :  { %p3599_p1 = pnand %p3598_p0, %p3592_p11 }
  0x45   :  { %3602 = shalt.err (!%p3599_p1)
}
  0x46   :  { %90 = dma.hbm_to_vmem [thread:$0]  %s3798_s7, 1024, %s85_s17, [#allocation12], %s3642_s0, %s3642_s0, %s3643_s13  }
  0x47   :  { %3623 = dma.done.wait [#allocation3], 448  }
  0x48   :  { %3624 = vsyncadd [#allocation3], 4294966848 }
  0x49   :  { %3625 = dma.done.wait [#allocation6], 28736  }
  0x4a   :  { %3626 = vsyncadd [#allocation6], 4294938560 }
  0x4b   :  { %3627 = dma.done.wait [#allocation9], 10240  }
  0x4c   :  { %3628 = vsyncadd [#allocation9], 4294957056 }
  0x4d   :  { %3629 = dma.done.wait [#allocation12], 1024  }
  0x4e   :  { %3630 = vsyncadd [#allocation12], 4294966272  ;;  %v3020_v0 = vld [vmem:[#allocation5 + $0xe4] ss:$16 sps:$4 sm:$0xff]   ;;  %v3024_v2 = vld [vmem:[#allocation5 + $0xe0] ss:$16 sps:$4 sm:$0xff]  }
  0x4f   :  { %v3022_v1 = vld [vmem:[#allocation5 + $0x2e4] ss:$16 sps:$4 sm:$0xff]   ;;  %1507 = vmatprep.subr.bf16.mxu0 %v3020_v0  ;;  %v3025_v3 = vld [vmem:[#allocation5 + $0x2e0] ss:$16 sps:$4 sm:$0xff]   ;;  %vm3647_vm0 = vmmov 0   ;;  %s3648_s23 = smov [#allocation13]  }
  0x50   :  { %1548 = vmatprep.subr.bf16.mxu1 %v3022_v1  ;;  %v3026_v4 = vld [vmem:[#allocation5 + $0xc4] ss:$16 sps:$4 sm:$0xff]   ;;  %1508 = vmatpush1.bf16.msra.mxu0 %v3024_v2  ;;  %v3030_v6 = vld [vmem:[#allocation5 + $0xc0] ss:$16 sps:$4 sm:$0xff]   ;;  %s2620_s24 = sshll.u32 %s3648_s23, 4  ;;  %s2621_s24 = int_to_ptr.vmem [resolvable:$true] %s2620_s24 }
  0x51   :  { %1549 = vmatpush1.bf16.msra.mxu1 %v3025_v3  ;;  %v3028_v5 = vld [vmem:[#allocation5 + $0x2c4] ss:$16 sps:$4 sm:$0xff]   ;;  %1509 = vmatprep.subr.bf16.mxu0 %v3026_v4  ;;  %v3031_v7 = vld [vmem:[#allocation5 + $0x2c0] ss:$16 sps:$4 sm:$0xff]   ;;  %p3608_p3 = scmp.lt.s32.totalorder %s2621_s24, %s2621_s24 }
  0x52   :  { %1550 = vmatprep.subr.bf16.mxu1 %v3028_v5  ;;  %v3032_v8 = vld [vmem:[#allocation5 + $0xa4] ss:$16 sps:$4 sm:$0xff]   ;;  %v3036_v10 = vld [vmem:[#allocation5 + $0xa0] ss:$16 sps:$4 sm:$0xff]  }
  0x53   :  { %v3034_v9 = vld [vmem:[#allocation5 + $0x2a4] ss:$16 sps:$4 sm:$0xff]   ;;  %v3037_v11 = vld [vmem:[#allocation5 + $0x2a0] ss:$16 sps:$4 sm:$0xff]  }
  0x54   :  { %1510 = vmatpush1.bf16.msra.mxu0 %v3030_v6  ;;  %v3038_v12 = vld [vmem:[#allocation5 + $0x84] ss:$16 sps:$4 sm:$0xff]   ;;  %v3042_v14 = vld [vmem:[#allocation5 + $0x80] ss:$16 sps:$4 sm:$0xff]  }
  0x55   :  { %1551 = vmatpush1.bf16.msra.mxu1 %v3031_v7  ;;  %1511 = vmatprep.subr.bf16.mxu0 %v3032_v8  ;;  %v3040_v13 = vld [vmem:[#allocation5 + $0x284] ss:$16 sps:$4 sm:$0xff]   ;;  %v3043_v15 = vld [vmem:[#allocation5 + $0x280] ss:$16 sps:$4 sm:$0xff]  }
  0x56   :  { %1552 = vmatprep.subr.bf16.mxu1 %v3034_v9  ;;  %v3044_v16 = vld [vmem:[#allocation5 + $0x64] ss:$16 sps:$4 sm:$0xff]   ;;  %v3048_v18 = vld [vmem:[#allocation5 + $0x60] ss:$16 sps:$4 sm:$0xff]  }
  0x57   :  { %v3046_v17 = vld [vmem:[#allocation5 + $0x264] ss:$16 sps:$4 sm:$0xff]   ;;  %v3049_v19 = vld [vmem:[#allocation5 + $0x260] ss:$16 sps:$4 sm:$0xff]  }
  0x58   :  { %1512 = vmatpush1.bf16.msra.mxu0 %v3036_v10  ;;  %v3050_v20 = vld [vmem:[#allocation5 + $0x44] ss:$16 sps:$4 sm:$0xff]   ;;  %v3054_v22 = vld [vmem:[#allocation5 + $0x40] ss:$16 sps:$4 sm:$0xff]  }
  0x59   :  { %1553 = vmatpush1.bf16.msra.mxu1 %v3037_v11  ;;  %1513 = vmatprep.subr.bf16.mxu0 %v3038_v12  ;;  %v3052_v21 = vld [vmem:[#allocation5 + $0x244] ss:$16 sps:$4 sm:$0xff]   ;;  %v3055_v23 = vld [vmem:[#allocation5 + $0x240] ss:$16 sps:$4 sm:$0xff]  }
  0x5a   :  { %1554 = vmatprep.subr.bf16.mxu1 %v3040_v13  ;;  %v3056_v24 = vld [vmem:[#allocation5 + $0x24] ss:$16 sps:$4 sm:$0xff]   ;;  %v3060_v26 = vld [vmem:[#allocation5 + $0x20] ss:$16 sps:$4 sm:$0xff]  }
  0x5b   :  { %v3058_v25 = vld [vmem:[#allocation5 + $0x224] ss:$16 sps:$4 sm:$0xff]   ;;  %v3061_v27 = vld [vmem:[#allocation5 + $0x220] ss:$16 sps:$4 sm:$0xff]  }
  0x5c   :  { %1514 = vmatpush1.bf16.msra.mxu0 %v3042_v14  ;;  %v3062_v28 = vld [vmem:[#allocation5 + $0x4] ss:$16 sps:$4 sm:$0xff]   ;;  %v3066_v30 = vld [vmem:[#allocation5] ss:$16 sps:$4 sm:$0xff]  }
  0x5d   :  { %1555 = vmatpush1.bf16.msra.mxu1 %v3043_v15  ;;  %1515 = vmatprep.subr.bf16.mxu0 %v3044_v16  ;;  %v3064_v29 = vld [vmem:[#allocation5 + $0x204] ss:$16 sps:$4 sm:$0xff]   ;;  %v3067_v31 = vld [vmem:[#allocation5 + $0x200] ss:$16 sps:$4 sm:$0xff]   ;;  %v3645_v16 = vmov 0  }
  0x5e   :  { %1556 = vmatprep.subr.bf16.mxu1 %v3046_v17  ;;  %v3068_v32 = vld [vmem:[#allocation5 + $0x1e4] ss:$16 sps:$4 sm:$0xff]   ;;  %v3072_v34 = vld [vmem:[#allocation5 + $0x1e0] ss:$16 sps:$4 sm:$0xff]  }
  0x5f   :  { %v3070_v33 = vld [vmem:[#allocation5 + $0x3e4] ss:$16 sps:$4 sm:$0xff]   ;;  %v3073_v35 = vld [vmem:[#allocation5 + $0x3e0] ss:$16 sps:$4 sm:$0xff]  }
  0x60   :  { %1516 = vmatpush1.bf16.msra.mxu0 %v3048_v18  ;;  %v3074_v36 = vld [vmem:[#allocation5 + $0x1c4] ss:$16 sps:$4 sm:$0xff]   ;;  %v3078_v38 = vld [vmem:[#allocation5 + $0x1c0] ss:$16 sps:$4 sm:$0xff]  }
  0x61   :  { %1557 = vmatpush1.bf16.msra.mxu1 %v3049_v19  ;;  %1517 = vmatprep.subr.bf16.mxu0 %v3050_v20  ;;  %v3076_v37 = vld [vmem:[#allocation5 + $0x3c4] ss:$16 sps:$4 sm:$0xff]   ;;  %v3079_v39 = vld [vmem:[#allocation5 + $0x3c0] ss:$16 sps:$4 sm:$0xff]  }
  0x62   :  { %1558 = vmatprep.subr.bf16.mxu1 %v3052_v21  ;;  %v3080_v40 = vld [vmem:[#allocation5 + $0x1a4] ss:$16 sps:$4 sm:$0xff]   ;;  %v3084_v42 = vld [vmem:[#allocation5 + $0x1a0] ss:$16 sps:$4 sm:$0xff]  }
  0x63   :  { %v3082_v41 = vld [vmem:[#allocation5 + $0x3a4] ss:$16 sps:$4 sm:$0xff]   ;;  %v3085_v43 = vld [vmem:[#allocation5 + $0x3a0] ss:$16 sps:$4 sm:$0xff]  }
  0x64   :  { %1518 = vmatpush1.bf16.msra.mxu0 %v3054_v22  ;;  %v3086_v44 = vld [vmem:[#allocation5 + $0x184] ss:$16 sps:$4 sm:$0xff]   ;;  %v113_v48 = vld [vmem:[#allocation2 + $0x8] sm:$0xff] }
  0x65   :  { %1559 = vmatpush1.bf16.msra.mxu1 %v3055_v23  ;;  %1519 = vmatprep.subr.bf16.mxu0 %v3056_v24  ;;  %v3088_v45 = vld [vmem:[#allocation5 + $0x384] ss:$16 sps:$4 sm:$0xff]   ;;  %v3090_v49 = vld [vmem:[#allocation5 + $0x180] ss:$16 sps:$4 sm:$0xff]   ;;  %v3719_v51 = vcombine.high %v113_v48, %v113_v48  ;;  %v3725_v7 = vcombine.low %v113_v48, %v113_v48  ;;  %v3180_v48 = vld [vmem:[#allocation5 + $0xcc] ss:$16 sps:$4 sm:$0xff]  }
  0x66   :  { %1560 = vmatprep.subr.bf16.mxu1 %v3058_v25  ;;  %v112_v46 = vld [vmem:[#allocation2] sm:$0xff]  ;;  %v3091_v50 = vld [vmem:[#allocation5 + $0x380] ss:$16 sps:$4 sm:$0xff]  }
  0x67   :  { %v3717_v47 = vcombine.high %v112_v46, %v112_v46  ;;  %v3092_v52 = vld [vmem:[#allocation5 + $0x164] ss:$16 sps:$4 sm:$0xff]   ;;  %1580 = vmatprep.mubr.bf16.mxu1 %v3719_v51  ;;  %v3096_v54 = vld [vmem:[#allocation5 + $0x160] ss:$16 sps:$4 sm:$0xff]   ;;  %v3723_v6 = vcombine.low %v112_v46, %v112_v46 }
  0x68   :  { %1520 = vmatpush1.bf16.msra.mxu0 %v3060_v26  ;;  %v3094_v53 = vld [vmem:[#allocation5 + $0x364] ss:$16 sps:$4 sm:$0xff]   ;;  %v3097_v55 = vld [vmem:[#allocation5 + $0x360] ss:$16 sps:$4 sm:$0xff]  }
  0x69   :  { %1561 = vmatpush1.bf16.msra.mxu1 %v3061_v27  ;;  %1521 = vmatprep.subr.bf16.mxu0 %v3062_v28  ;;  %v3098_v56 = vld [vmem:[#allocation5 + $0x144] ss:$16 sps:$4 sm:$0xff]   ;;  %v3102_v58 = vld [vmem:[#allocation5 + $0x140] ss:$16 sps:$4 sm:$0xff]  }
  0x6a   :  { %1562 = vmatprep.subr.bf16.mxu1 %v3064_v29  ;;  %1539 = vmatprep.mubr.bf16.mxu0 %v3717_v47  ;;  %v3100_v57 = vld [vmem:[#allocation5 + $0x344] ss:$16 sps:$4 sm:$0xff]   ;;  %v3103_v59 = vld [vmem:[#allocation5 + $0x340] ss:$16 sps:$4 sm:$0xff]  }
  0x6b   :  { %v3104_v60 = vld [vmem:[#allocation5 + $0x124] ss:$16 sps:$4 sm:$0xff]   ;;  %v3108_v62 = vld [vmem:[#allocation5 + $0x120] ss:$16 sps:$4 sm:$0xff]  }
  0x6c   :  { %1522 = vmatpush1.bf16.msra.mxu0 %v3066_v30  ;;  %v3106_v61 = vld [vmem:[#allocation5 + $0x324] ss:$16 sps:$4 sm:$0xff]   ;;  %v3109_v63 = vld [vmem:[#allocation5 + $0x320] ss:$16 sps:$4 sm:$0xff]  }
  0x6d   :  { %1563 = vmatpush1.bf16.msra.mxu1 %v3067_v31  ;;  %1523 = vmatprep.subr.bf16.mxu0 %v3068_v32  ;;  %v3110_v0 = vld [vmem:[#allocation5 + $0x104] ss:$16 sps:$4 sm:$0xff]   ;;  %v3114_v2 = vld [vmem:[#allocation5 + $0x100] ss:$16 sps:$4 sm:$0xff]  }
  0x6e   :  { %1564 = vmatprep.subr.bf16.mxu1 %v3070_v33  ;;  %v3112_v1 = vld [vmem:[#allocation5 + $0x304] ss:$16 sps:$4 sm:$0xff]   ;;  %v3115_v3 = vld [vmem:[#allocation5 + $0x300] ss:$16 sps:$4 sm:$0xff]  }
  0x6f   :  { %v3122_v4 = vld [vmem:[#allocation5 + $0x4e4] ss:$16 sps:$4 sm:$0xff]   ;;  %v3120_v8 = vld [vmem:[#allocation5 + $0x4e0] ss:$16 sps:$4 sm:$0xff]  }
  0x70   :  { %1524 = vmatpush2.bf16.msra.mxu0 %v3072_v34  ;;  %v3125_v5 = vld [vmem:[#allocation5 + $0x6e4] ss:$16 sps:$4 sm:$0xff]   ;;  %v3123_v9 = vld [vmem:[#allocation5 + $0x6e0] ss:$16 sps:$4 sm:$0xff]  }
  0x71   :  { %1565 = vmatpush2.bf16.msra.mxu1 %v3073_v35  ;;  %1525 = vmatprep.subr.bf16.mxu0 %v3074_v36  ;;  %v3128_v10 = vld [vmem:[#allocation5 + $0x4c4] ss:$16 sps:$4 sm:$0xff]   ;;  %v3126_v12 = vld [vmem:[#allocation5 + $0x4c0] ss:$16 sps:$4 sm:$0xff]  }
  0x72   :  { %1566 = vmatprep.subr.bf16.mxu1 %v3076_v37  ;;  %v3131_v11 = vld [vmem:[#allocation5 + $0x6c4] ss:$16 sps:$4 sm:$0xff]   ;;  %v3129_v13 = vld [vmem:[#allocation5 + $0x6c0] ss:$16 sps:$4 sm:$0xff]  }
  0x73   :  { %v3134_v14 = vld [vmem:[#allocation5 + $0x4a4] ss:$16 sps:$4 sm:$0xff]   ;;  %v3132_v17 = vld [vmem:[#allocation5 + $0x4a0] ss:$16 sps:$4 sm:$0xff]  }
  0x74   :  { %1526 = vmatpush2.bf16.msra.mxu0 %v3078_v38  ;;  %v3137_v15 = vld [vmem:[#allocation5 + $0x6a4] ss:$16 sps:$4 sm:$0xff]   ;;  %v3135_v18 = vld [vmem:[#allocation5 + $0x6a0] ss:$16 sps:$4 sm:$0xff]  }
  0x75   :  { %1567 = vmatpush2.bf16.msra.mxu1 %v3079_v39  ;;  %1527 = vmatprep.subr.bf16.mxu0 %v3080_v40  ;;  %v3140_v19 = vld [vmem:[#allocation5 + $0x484] ss:$16 sps:$4 sm:$0xff]   ;;  %v3138_v21 = vld [vmem:[#allocation5 + $0x480] ss:$16 sps:$4 sm:$0xff]  }
  0x76   :  { %1568 = vmatprep.subr.bf16.mxu1 %v3082_v41  ;;  %v3143_v20 = vld [vmem:[#allocation5 + $0x684] ss:$16 sps:$4 sm:$0xff]   ;;  %v3141_v22 = vld [vmem:[#allocation5 + $0x680] ss:$16 sps:$4 sm:$0xff]  }
  0x77   :  { %v3146_v23 = vld [vmem:[#allocation5 + $0x464] ss:$16 sps:$4 sm:$0xff]   ;;  %v3144_v25 = vld [vmem:[#allocation5 + $0x460] ss:$16 sps:$4 sm:$0xff]  }
  0x78   :  { %1528 = vmatpush2.bf16.msra.mxu0 %v3084_v42  ;;  %v3149_v24 = vld [vmem:[#allocation5 + $0x664] ss:$16 sps:$4 sm:$0xff]   ;;  %v3147_v26 = vld [vmem:[#allocation5 + $0x660] ss:$16 sps:$4 sm:$0xff]   ;;  %v3174_v42 = vld [vmem:[#allocation5 + $0xec] ss:$16 sps:$4 sm:$0xff]  }
  0x79   :  { %1569 = vmatpush2.bf16.msra.mxu1 %v3085_v43  ;;  %1529 = vmatprep.subr.bf16.mxu0 %v3086_v44  ;;  %v3152_v27 = vld [vmem:[#allocation5 + $0x444] ss:$16 sps:$4 sm:$0xff]   ;;  %v3150_v29 = vld [vmem:[#allocation5 + $0x440] ss:$16 sps:$4 sm:$0xff]   ;;  %v3737_v44 = vld [vmem:[#allocation2 + $0x18] ss:$0 sps:$4 sm:$0xff]  }
  0x7a   :  { %1570 = vmatprep.subr.bf16.mxu1 %v3088_v45  ;;  %v3155_v28 = vld [vmem:[#allocation5 + $0x644] ss:$16 sps:$4 sm:$0xff]   ;;  %v3153_v30 = vld [vmem:[#allocation5 + $0x640] ss:$16 sps:$4 sm:$0xff]   ;;  %v3172_v45 = vld [vmem:[#allocation5 + $0xe8] ss:$16 sps:$4 sm:$0xff]  }
  0x7b   :  { %v3158_v31 = vld [vmem:[#allocation5 + $0x424] ss:$16 sps:$4 sm:$0xff]   ;;  %v3156_v34 = vld [vmem:[#allocation5 + $0x420] ss:$16 sps:$4 sm:$0xff]  }
  0x7c   :  { %1530 = vmatpush2.bf16.msra.mxu0 %v3090_v49  ;;  %v3161_v32 = vld [vmem:[#allocation5 + $0x624] ss:$16 sps:$4 sm:$0xff]   ;;  %v3159_v36 = vld [vmem:[#allocation5 + $0x620] ss:$16 sps:$4 sm:$0xff]  }
  0x7d   :  { %1571 = vmatpush2.bf16.msra.mxu1 %v3091_v50  ;;  %1531 = vmatprep.subr.bf16.mxu0 %v3092_v52  ;;  %v3730_v33 = vld [vmem:[#allocation2 + $0x10] sm:$0xff]  ;;  %v3162_v39 = vld [vmem:[#allocation5 + $0x400] ss:$16 sps:$4 sm:$0xff]  }
  0x7e   :  { %1572 = vmatprep.subr.bf16.mxu1 %v3094_v53  ;;  %v3734_v35 = vcombine.high %v3730_v33, %v3730_v33  ;;  %v3164_v37 = vld [vmem:[#allocation5 + $0x404] ss:$16 sps:$4 sm:$0xff]   ;;  %v3165_v40 = vld [vmem:[#allocation5 + $0x600] ss:$16 sps:$4 sm:$0xff]   ;;  %v3178_v50 = vld [vmem:[#allocation5 + $0xc8] ss:$16 sps:$4 sm:$0xff]  }
  0x7f   :  { %v3167_v38 = vld [vmem:[#allocation5 + $0x604] ss:$16 sps:$4 sm:$0xff]   ;;  %v3168_v43 = vld [vmem:[#allocation5 + $0x5e0] ss:$16 sps:$4 sm:$0xff]   ;;  %v3186_v53 = vld [vmem:[#allocation5 + $0xac] ss:$16 sps:$4 sm:$0xff]  }
  0x80   :  { %1532 = vmatpush2.bf16.msra.mxu0 %v3096_v54  ;;  %v3170_v41 = vld [vmem:[#allocation5 + $0x5e4] ss:$16 sps:$4 sm:$0xff]   ;;  %v3175_v49 = vld [vmem:[#allocation5 + $0x5c0] ss:$16 sps:$4 sm:$0xff]  }
  0x81   :  { %1573 = vmatpush2.bf16.msra.mxu1 %v3097_v55  ;;  %1533 = vmatprep.subr.bf16.mxu0 %v3098_v56  ;;  %v3177_v46 = vld [vmem:[#allocation5 + $0x5c4] ss:$16 sps:$4 sm:$0xff]   ;;  %v3181_v54 = vld [vmem:[#allocation5 + $0x5a0] ss:$16 sps:$4 sm:$0xff]   ;;  %v3184_v55 = vld [vmem:[#allocation5 + $0xa8] ss:$16 sps:$4 sm:$0xff]  }
  0x82   :  { %1574 = vmatprep.subr.bf16.mxu1 %v3100_v57  ;;  %v3183_v52 = vld [vmem:[#allocation5 + $0x5a4] ss:$16 sps:$4 sm:$0xff]   ;;  %v3192_v57 = vld [vmem:[#allocation5 + $0x8c] ss:$16 sps:$4 sm:$0xff]  }
  0x83   :  { %v3189_v56 = vld [vmem:[#allocation5 + $0x584] ss:$16 sps:$4 sm:$0xff]  }
  0x84   :  { %1534 = vmatpush2.bf16.msra.mxu0 %v3102_v58  ;;  %v3187_v58 = vld [vmem:[#allocation5 + $0x580] ss:$16 sps:$4 sm:$0xff]  }
  0x85   :  { %1575 = vmatpush2.bf16.msra.mxu1 %v3103_v59  ;;  %1535 = vmatprep.subr.bf16.mxu0 %v3104_v60  ;;  %v3190_v59 = vld [vmem:[#allocation5 + $0x88] ss:$16 sps:$4 sm:$0xff]   ;;  %v3195_v60 = vld [vmem:[#allocation5 + $0x564] ss:$16 sps:$4 sm:$0xff]  }
  0x86   :  { %1576 = vmatprep.subr.bf16.mxu1 %v3106_v61  ;;  %v3198_v61 = vld [vmem:[#allocation5 + $0x6c] ss:$16 sps:$4 sm:$0xff]  }
  0x88   :  { %1536 = vmatpush2.bf16.msra.mxu0 %v3108_v62  ;;  %v3193_v62 = vld [vmem:[#allocation5 + $0x560] ss:$16 sps:$4 sm:$0xff]  }
  0x89   :  { %1577 = vmatpush2.bf16.msra.mxu1 %v3109_v63  ;;  %1537 = vmatprep.subr.bf16.mxu0 %v3110_v0  ;;  %v3201_v63 = vld [vmem:[#allocation5 + $0x544] ss:$16 sps:$4 sm:$0xff]   ;;  %v3204_v0 = vld [vmem:[#allocation5 + $0x4c] ss:$16 sps:$4 sm:$0xff]  }
  0x8a   :  { %1578 = vmatprep.subr.bf16.mxu1 %v3112_v1  ;;  %v3199_v1 = vld [vmem:[#allocation5 + $0x540] ss:$16 sps:$4 sm:$0xff]  }
  0x8c   :  { %1538 = vmatpush2.bf16.msra.mxu0 %v3114_v2  ;;  %v3202_v2 = vld [vmem:[#allocation5 + $0x48] ss:$16 sps:$4 sm:$0xff]  }
  0x8d   :  { %1579 = vmatpush2.bf16.msra.mxu1 %v3115_v3  ;;  %1589 = vmatprep.subr.bf16.mxu0 %v3122_v4  ;;  %v3207_v3 = vld [vmem:[#allocation5 + $0x524] ss:$16 sps:$4 sm:$0xff]   ;;  %v3210_v4 = vld [vmem:[#allocation5 + $0x2c] ss:$16 sps:$4 sm:$0xff]  }
  0x8e   :  { %1630 = vmatprep.subr.bf16.mxu1 %v3125_v5  ;;  %v3205_v5 = vld [vmem:[#allocation5 + $0x520] ss:$16 sps:$4 sm:$0xff]  }
  0x8f   :  { %1540 = vmatmul.mubr.bf16.vlgmr.msra.gmra.mxu0 %v3723_v6 }
  0x90   :  { %1581 = vmatmul.mubr.bf16.vlgmr.msra.gmra.mxu1 %v3725_v7  ;;  %1590 = vmatpush1.bf16.msra.mxu0 %v3120_v8  ;;  %v3208_v8 = vld [vmem:[#allocation5 + $0x28] ss:$16 sps:$4 sm:$0xff]  }
  0x91   :  { %1631 = vmatpush1.bf16.msra.mxu1 %v3123_v9  ;;  %1591 = vmatprep.subr.bf16.mxu0 %v3128_v10  ;;  %v3213_v9 = vld [vmem:[#allocation5 + $0x504] ss:$16 sps:$4 sm:$0xff]   ;;  %v3216_v10 = vld [vmem:[#allocation5 + $0xc] ss:$16 sps:$4 sm:$0xff]  }
  0x92   :  { %1632 = vmatprep.subr.bf16.mxu1 %v3131_v11  ;;  %1662 = vmatprep.mubr.bf16.mxu1 %v3645_v16  ;;  %v3211_v11 = vld [vmem:[#allocation5 + $0x500] ss:$16 sps:$4 sm:$0xff]  }
  0x93   :  { %1621 = vmatprep.mubr.bf16.mxu0 %v3734_v35 }
  0x94   :  { %1592 = vmatpush1.bf16.msra.mxu0 %v3126_v12  ;;  %v3214_v12 = vld [vmem:[#allocation5 + $0x8] ss:$16 sps:$4 sm:$0xff]  }
  0x95   :  { %1633 = vmatpush1.bf16.msra.mxu1 %v3129_v13  ;;  %1593 = vmatprep.subr.bf16.mxu0 %v3134_v14  ;;  %v3221_v13 = vld [vmem:[#allocation5 + $0x1ec] ss:$16 sps:$4 sm:$0xff]  }
  0x96   :  { %1634 = vmatprep.subr.bf16.mxu1 %v3137_v15  ;;  %v3224_v14 = vld [vmem:[#allocation5 + $0x2ec] ss:$16 sps:$4 sm:$0xff]   ;;  %v3743_v15 = vcombine.low %v3730_v33, %v3730_v33  ;;  %v3243_v33 = vld [vmem:[#allocation5 + $0x168] ss:$16 sps:$4 sm:$0xff]  }
  0x98   :  { %1594 = vmatpush1.bf16.msra.mxu0 %v3132_v17  ;;  %v3219_v17 = vld [vmem:[#allocation5 + $0x1e8] ss:$16 sps:$4 sm:$0xff]  }
  0x99   :  { %1635 = vmatpush1.bf16.msra.mxu1 %v3135_v18  ;;  %1595 = vmatprep.subr.bf16.mxu0 %v3140_v19  ;;  %v3222_v18 = vld [vmem:[#allocation5 + $0x2e8] ss:$16 sps:$4 sm:$0xff]   ;;  %v3227_v19 = vld [vmem:[#allocation5 + $0x1cc] ss:$16 sps:$4 sm:$0xff]  }
  0x9a   :  { %1636 = vmatprep.subr.bf16.mxu1 %v3143_v20  ;;  %v3230_v20 = vld [vmem:[#allocation5 + $0x2cc] ss:$16 sps:$4 sm:$0xff]  }
  0x9c   :  { %1596 = vmatpush1.bf16.msra.mxu0 %v3138_v21  ;;  %v3225_v21 = vld [vmem:[#allocation5 + $0x1c8] ss:$16 sps:$4 sm:$0xff]  }
  0x9d   :  { %1637 = vmatpush1.bf16.msra.mxu1 %v3141_v22  ;;  %1597 = vmatprep.subr.bf16.mxu0 %v3146_v23  ;;  %v3228_v22 = vld [vmem:[#allocation5 + $0x2c8] ss:$16 sps:$4 sm:$0xff]   ;;  %v3233_v23 = vld [vmem:[#allocation5 + $0x1ac] ss:$16 sps:$4 sm:$0xff]  }
  0x9e   :  { %1638 = vmatprep.subr.bf16.mxu1 %v3149_v24  ;;  %v3236_v24 = vld [vmem:[#allocation5 + $0x2ac] ss:$16 sps:$4 sm:$0xff]  }
  0xa0   :  { %1598 = vmatpush1.bf16.msra.mxu0 %v3144_v25  ;;  %v3231_v25 = vld [vmem:[#allocation5 + $0x1a8] ss:$16 sps:$4 sm:$0xff]  }
  0xa1   :  { %1639 = vmatpush1.bf16.msra.mxu1 %v3147_v26  ;;  %1599 = vmatprep.subr.bf16.mxu0 %v3152_v27  ;;  %v3234_v26 = vld [vmem:[#allocation5 + $0x2a8] ss:$16 sps:$4 sm:$0xff]   ;;  %v3239_v27 = vld [vmem:[#allocation5 + $0x18c] ss:$16 sps:$4 sm:$0xff]  }
  0xa2   :  { %1640 = vmatprep.subr.bf16.mxu1 %v3155_v28  ;;  %v3242_v28 = vld [vmem:[#allocation5 + $0x28c] ss:$16 sps:$4 sm:$0xff]  }
  0xa4   :  { %1600 = vmatpush1.bf16.msra.mxu0 %v3150_v29  ;;  %v3237_v29 = vld [vmem:[#allocation5 + $0x188] ss:$16 sps:$4 sm:$0xff]  }
  0xa5   :  { %1641 = vmatpush1.bf16.msra.mxu1 %v3153_v30  ;;  %1601 = vmatprep.subr.bf16.mxu0 %v3158_v31  ;;  %v3240_v30 = vld [vmem:[#allocation5 + $0x288] ss:$16 sps:$4 sm:$0xff]   ;;  %v3245_v31 = vld [vmem:[#allocation5 + $0x16c] ss:$16 sps:$4 sm:$0xff]  }
  0xa6   :  { %1642 = vmatprep.subr.bf16.mxu1 %v3161_v32  ;;  %v3248_v32 = vld [vmem:[#allocation5 + $0x26c] ss:$16 sps:$4 sm:$0xff]  }
  0xa8   :  { %1602 = vmatpush1.bf16.msra.mxu0 %v3156_v34  ;;  %v3251_v34 = vld [vmem:[#allocation5 + $0x14c] ss:$16 sps:$4 sm:$0xff]  }
  0xa9   :  { %1643 = vmatpush1.bf16.msra.mxu1 %v3159_v36  ;;  %1603 = vmatprep.subr.bf16.mxu0 %v3164_v37  ;;  %v3254_v36 = vld [vmem:[#allocation5 + $0x24c] ss:$16 sps:$4 sm:$0xff]   ;;  %v3249_v37 = vld [vmem:[#allocation5 + $0x148] ss:$16 sps:$4 sm:$0xff]  }
  0xaa   :  { %1644 = vmatprep.subr.bf16.mxu1 %v3167_v38  ;;  %v3252_v38 = vld [vmem:[#allocation5 + $0x248] ss:$16 sps:$4 sm:$0xff]  }
  0xac   :  { %1604 = vmatpush1.bf16.msra.mxu0 %v3162_v39  ;;  %v3257_v39 = vld [vmem:[#allocation5 + $0x12c] ss:$16 sps:$4 sm:$0xff]  }
  0xad   :  { %1645 = vmatpush1.bf16.msra.mxu1 %v3165_v40  ;;  %1605 = vmatprep.subr.bf16.mxu0 %v3170_v41  ;;  %v3260_v40 = vld [vmem:[#allocation5 + $0x22c] ss:$16 sps:$4 sm:$0xff]   ;;  %v3255_v41 = vld [vmem:[#allocation5 + $0x128] ss:$16 sps:$4 sm:$0xff]  }
  0xae   :  { %1671 = vmatprep.subr.bf16.mxu1 %v3174_v42  ;;  %v3258_v42 = vld [vmem:[#allocation5 + $0x228] ss:$16 sps:$4 sm:$0xff]  }
  0xb0   :  { %1663 = vmatmul.mubr.bf16.vlgmr.msra.gmra.mxu1 %v3737_v44  ;;  %1606 = vmatpush2.bf16.msra.mxu0 %v3168_v43  ;;  %v3263_v43 = vld [vmem:[#allocation5 + $0x10c] ss:$16 sps:$4 sm:$0xff]  }
  0xb1   :  { %1672 = vmatpush1.bf16.msra.mxu1 %v3172_v45  ;;  %1607 = vmatprep.subr.bf16.mxu0 %v3177_v46  ;;  %v3266_v45 = vld [vmem:[#allocation5 + $0x20c] ss:$16 sps:$4 sm:$0xff]   ;;  %v3261_v46 = vld [vmem:[#allocation5 + $0x108] ss:$16 sps:$4 sm:$0xff]  }
  0xb2   :  { %1673 = vmatprep.subr.bf16.mxu1 %v3180_v48  ;;  %1703 = vmatprep.mubr.bf16.mxu1 %v3717_v47  ;;  %v3196_v47 = vld [vmem:[#allocation5 + $0x68] ss:$16 sps:$4 sm:$0xff]  }
  0xb3   :  { %v3264_v48 = vld [vmem:[#allocation5 + $0x208] ss:$16 sps:$4 sm:$0xff]  }
  0xb4   :  { %1608 = vmatpush2.bf16.msra.mxu0 %v3175_v49  ;;  %v3269_v49 = vld [vmem:[#allocation5 + $0x3ec] ss:$16 sps:$4 sm:$0xff]  }
  0xb5   :  { %1674 = vmatpush1.bf16.msra.mxu1 %v3178_v50  ;;  %1609 = vmatprep.subr.bf16.mxu0 %v3183_v52  ;;  %v3272_v50 = vld [vmem:[#allocation5 + $0x4ec] ss:$16 sps:$4 sm:$0xff]   ;;  %v3267_v52 = vld [vmem:[#allocation5 + $0x3e8] ss:$16 sps:$4 sm:$0xff]  }
  0xb6   :  { %1675 = vmatprep.subr.bf16.mxu1 %v3186_v53  ;;  %v3270_v53 = vld [vmem:[#allocation5 + $0x4e8] ss:$16 sps:$4 sm:$0xff]  }
  0xb8   :  { %1610 = vmatpush2.bf16.msra.mxu0 %v3181_v54  ;;  %v3275_v54 = vld [vmem:[#allocation5 + $0x3cc] ss:$16 sps:$4 sm:$0xff]  }
  0xb9   :  { %1676 = vmatpush1.bf16.msra.mxu1 %v3184_v55  ;;  %1611 = vmatprep.subr.bf16.mxu0 %v3189_v56  ;;  %v3278_v55 = vld [vmem:[#allocation5 + $0x4cc] ss:$16 sps:$4 sm:$0xff]   ;;  %v3273_v56 = vld [vmem:[#allocation5 + $0x3c8] ss:$16 sps:$4 sm:$0xff]  }
  0xba   :  { %1677 = vmatprep.subr.bf16.mxu1 %v3192_v57  ;;  %v3276_v57 = vld [vmem:[#allocation5 + $0x4c8] ss:$16 sps:$4 sm:$0xff]  }
  0xbc   :  { %1612 = vmatpush2.bf16.msra.mxu0 %v3187_v58  ;;  %v3281_v58 = vld [vmem:[#allocation5 + $0x3ac] ss:$16 sps:$4 sm:$0xff]  }
  0xbd   :  { %1678 = vmatpush1.bf16.msra.mxu1 %v3190_v59  ;;  %1613 = vmatprep.subr.bf16.mxu0 %v3195_v60  ;;  %v3284_v59 = vld [vmem:[#allocation5 + $0x4ac] ss:$16 sps:$4 sm:$0xff]   ;;  %v3279_v60 = vld [vmem:[#allocation5 + $0x3a8] ss:$16 sps:$4 sm:$0xff]  }
  0xbe   :  { %1679 = vmatprep.subr.bf16.mxu1 %v3198_v61  ;;  %v3282_v61 = vld [vmem:[#allocation5 + $0x4a8] ss:$16 sps:$4 sm:$0xff]  }
  0xc0   :  { %1614 = vmatpush2.bf16.msra.mxu0 %v3193_v62  ;;  %v3287_v62 = vld [vmem:[#allocation5 + $0x38c] ss:$16 sps:$4 sm:$0xff]  }
  0xc1   :  { %1680 = vmatpush1.bf16.msra.mxu1 %v3196_v47  ;;  %1615 = vmatprep.subr.bf16.mxu0 %v3201_v63  ;;  %v3290_v47 = vld [vmem:[#allocation5 + $0x48c] ss:$16 sps:$4 sm:$0xff]   ;;  %v3285_v63 = vld [vmem:[#allocation5 + $0x388] ss:$16 sps:$4 sm:$0xff]  }
  0xc2   :  { %1681 = vmatprep.subr.bf16.mxu1 %v3204_v0  ;;  %v3293_v0 = vld [vmem:[#allocation5 + $0x36c] ss:$16 sps:$4 sm:$0xff]  }
  0xc4   :  { %1616 = vmatpush2.bf16.msra.mxu0 %v3199_v1  ;;  %v3296_v1 = vld [vmem:[#allocation5 + $0x46c] ss:$16 sps:$4 sm:$0xff]  }
  0xc5   :  { %1682 = vmatpush1.bf16.msra.mxu1 %v3202_v2  ;;  %1617 = vmatprep.subr.bf16.mxu0 %v3207_v3  ;;  %v3291_v2 = vld [vmem:[#allocation5 + $0x368] ss:$16 sps:$4 sm:$0xff]  }
  0xc6   :  { %1683 = vmatprep.subr.bf16.mxu1 %v3210_v4  ;;  %v3294_v3 = vld [vmem:[#allocation5 + $0x468] ss:$16 sps:$4 sm:$0xff]   ;;  %v3299_v4 = vld [vmem:[#allocation5 + $0x34c] ss:$16 sps:$4 sm:$0xff]  }
  0xc8   :  { %1618 = vmatpush2.bf16.msra.mxu0 %v3205_v5  ;;  %v3302_v5 = vld [vmem:[#allocation5 + $0x44c] ss:$16 sps:$4 sm:$0xff]  }
  0xc9   :  { %1684 = vmatpush1.bf16.msra.mxu1 %v3208_v8  ;;  %1619 = vmatprep.subr.bf16.mxu0 %v3213_v9  ;;  %v3300_v8 = vld [vmem:[#allocation5 + $0x448] ss:$16 sps:$4 sm:$0xff]   ;;  %v3305_v9 = vld [vmem:[#allocation5 + $0x32c] ss:$16 sps:$4 sm:$0xff]  }
  0xca   :  { %1685 = vmatprep.subr.bf16.mxu1 %v3216_v10  ;;  %v3308_v10 = vld [vmem:[#allocation5 + $0x42c] ss:$16 sps:$4 sm:$0xff]  }
  0xcc   :  { %1620 = vmatpush2.bf16.msra.mxu0 %v3211_v11  ;;  %v3303_v11 = vld [vmem:[#allocation5 + $0x328] ss:$16 sps:$4 sm:$0xff]  }
  0xcd   :  { %1686 = vmatpush1.bf16.msra.mxu1 %v3214_v12  ;;  %1712 = vmatprep.subr.bf16.mxu0 %v3224_v14  ;;  %v3306_v12 = vld [vmem:[#allocation5 + $0x428] ss:$16 sps:$4 sm:$0xff]   ;;  %v3314_v14 = vld [vmem:[#allocation5 + $0x40c] ss:$16 sps:$4 sm:$0xff]  }
  0xce   :  { %1687 = vmatprep.subr.bf16.mxu1 %v3221_v13  ;;  %v3311_v13 = vld [vmem:[#allocation5 + $0x30c] ss:$16 sps:$4 sm:$0xff]  }
  0xcf   :  { %1622 = vmatmul.mubr.bf16.vlgmr.msra.gmra.mxu0 %v3743_v15 }
  0xd0   :  { %1713 = vmatpush1.bf16.msra.mxu0 %v3222_v18  ;;  %1744 = vmatprep.mubr.bf16.mxu0 %v3719_v51  ;;  %v3246_v51 = vld [vmem:[#allocation5 + $0x268] ss:$16 sps:$4 sm:$0xff]  }
  0xd1   :  { %1688 = vmatpush2.bf16.msra.mxu1 %v3219_v17  ;;  %1714 = vmatprep.subr.bf16.mxu0 %v3230_v20  ;;  %v3309_v17 = vld [vmem:[#allocation5 + $0x308] ss:$16 sps:$4 sm:$0xff]   ;;  %v3320_v20 = vld [vmem:[#allocation5 + $0x6ec] ss:$16 sps:$4 sm:$0xff]  }
  0xd2   :  { %1689 = vmatprep.subr.bf16.mxu1 %v3227_v19  ;;  %v3312_v18 = vld [vmem:[#allocation5 + $0x408] ss:$16 sps:$4 sm:$0xff]   ;;  %v3317_v19 = vld [vmem:[#allocation5 + $0x5ec] ss:$16 sps:$4 sm:$0xff]  }
  0xd4   :  { %1715 = vmatpush1.bf16.msra.mxu0 %v3228_v22  ;;  %v3318_v22 = vld [vmem:[#allocation5 + $0x6e8] ss:$16 sps:$4 sm:$0xff]  }
  0xd5   :  { %1690 = vmatpush2.bf16.msra.mxu1 %v3225_v21  ;;  %1716 = vmatprep.subr.bf16.mxu0 %v3236_v24  ;;  %v3315_v21 = vld [vmem:[#allocation5 + $0x5e8] ss:$16 sps:$4 sm:$0xff]   ;;  %v3326_v24 = vld [vmem:[#allocation5 + $0x6cc] ss:$16 sps:$4 sm:$0xff]  }
  0xd6   :  { %1691 = vmatprep.subr.bf16.mxu1 %v3233_v23  ;;  %v3323_v23 = vld [vmem:[#allocation5 + $0x5cc] ss:$16 sps:$4 sm:$0xff]  }
  0xd8   :  { %1717 = vmatpush1.bf16.msra.mxu0 %v3234_v26  ;;  %v3324_v26 = vld [vmem:[#allocation5 + $0x6c8] ss:$16 sps:$4 sm:$0xff]  }
  0xd9   :  { %1692 = vmatpush2.bf16.msra.mxu1 %v3231_v25  ;;  %1718 = vmatprep.subr.bf16.mxu0 %v3242_v28  ;;  %v3321_v25 = vld [vmem:[#allocation5 + $0x5c8] ss:$16 sps:$4 sm:$0xff]   ;;  %v3332_v28 = vld [vmem:[#allocation5 + $0x6ac] ss:$16 sps:$4 sm:$0xff]  }
  0xda   :  { %1693 = vmatprep.subr.bf16.mxu1 %v3239_v27  ;;  %v3329_v27 = vld [vmem:[#allocation5 + $0x5ac] ss:$16 sps:$4 sm:$0xff]  }
  0xdc   :  { %1719 = vmatpush1.bf16.msra.mxu0 %v3240_v30  ;;  %v3330_v30 = vld [vmem:[#allocation5 + $0x6a8] ss:$16 sps:$4 sm:$0xff]  }
  0xdd   :  { %1694 = vmatpush2.bf16.msra.mxu1 %v3237_v29  ;;  %1720 = vmatprep.subr.bf16.mxu0 %v3248_v32  ;;  %v3327_v29 = vld [vmem:[#allocation5 + $0x5a8] ss:$16 sps:$4 sm:$0xff]   ;;  %v3338_v32 = vld [vmem:[#allocation5 + $0x68c] ss:$16 sps:$4 sm:$0xff]  }
  0xde   :  { %1695 = vmatprep.subr.bf16.mxu1 %v3245_v31  ;;  %v3335_v31 = vld [vmem:[#allocation5 + $0x58c] ss:$16 sps:$4 sm:$0xff]  }
  0xe0   :  { %1721 = vmatpush1.bf16.msra.mxu0 %v3246_v51  ;;  %v3341_v51 = vld [vmem:[#allocation5 + $0x56c] ss:$16 sps:$4 sm:$0xff]  }
  0xe1   :  { %1696 = vmatpush2.bf16.msra.mxu1 %v3243_v33  ;;  %1722 = vmatprep.subr.bf16.mxu0 %v3254_v36  ;;  %v3333_v33 = vld [vmem:[#allocation5 + $0x588] ss:$16 sps:$4 sm:$0xff]  }
  0xe2   :  { %1697 = vmatprep.subr.bf16.mxu1 %v3251_v34  ;;  %v3344_v34 = vld [vmem:[#allocation5 + $0x66c] ss:$16 sps:$4 sm:$0xff]   ;;  %v3339_v36 = vld [vmem:[#allocation5 + $0x568] ss:$16 sps:$4 sm:$0xff]  }
  0xe4   :  { %1723 = vmatpush1.bf16.msra.mxu0 %v3252_v38  ;;  %v3350_v38 = vld [vmem:[#allocation5 + $0x64c] ss:$16 sps:$4 sm:$0xff]  }
  0xe5   :  { %1698 = vmatpush2.bf16.msra.mxu1 %v3249_v37  ;;  %1724 = vmatprep.subr.bf16.mxu0 %v3260_v40  ;;  %v3347_v37 = vld [vmem:[#allocation5 + $0x54c] ss:$16 sps:$4 sm:$0xff]   ;;  %v3348_v40 = vld [vmem:[#allocation5 + $0x648] ss:$16 sps:$4 sm:$0xff]  }
  0xe6   :  { %1699 = vmatprep.subr.bf16.mxu1 %v3257_v39  ;;  %v3345_v39 = vld [vmem:[#allocation5 + $0x548] ss:$16 sps:$4 sm:$0xff]  }
  0xe8   :  { %1725 = vmatpush1.bf16.msra.mxu0 %v3258_v42  ;;  %v3356_v42 = vld [vmem:[#allocation5 + $0x62c] ss:$16 sps:$4 sm:$0xff]  }
  0xe9   :  { %1700 = vmatpush2.bf16.msra.mxu1 %v3255_v41  ;;  %1726 = vmatprep.subr.bf16.mxu0 %v3266_v45  ;;  %v3353_v41 = vld [vmem:[#allocation5 + $0x52c] ss:$16 sps:$4 sm:$0xff]   ;;  %v3354_v45 = vld [vmem:[#allocation5 + $0x628] ss:$16 sps:$4 sm:$0xff]  }
  0xea   :  { %1701 = vmatprep.subr.bf16.mxu1 %v3263_v43  ;;  %v3351_v43 = vld [vmem:[#allocation5 + $0x528] ss:$16 sps:$4 sm:$0xff]  }
  0xec   :  { %1727 = vmatpush1.bf16.msra.mxu0 %v3264_v48  ;;  %v3362_v48 = vld [vmem:[#allocation5 + $0x60c] ss:$16 sps:$4 sm:$0xff]  }
  0xed   :  { %1702 = vmatpush2.bf16.msra.mxu1 %v3261_v46  ;;  %1728 = vmatprep.subr.bf16.mxu0 %v3269_v49  ;;  %v3359_v46 = vld [vmem:[#allocation5 + $0x50c] ss:$16 sps:$4 sm:$0xff]   ;;  %v3357_v49 = vld [vmem:[#allocation5 + $0x508] ss:$16 sps:$4 sm:$0xff]  }
  0xee   :  { %1753 = vmatprep.subr.bf16.mxu1 %v3272_v50  ;;  %v3360_v50 = vld [vmem:[#allocation5 + $0x608] ss:$16 sps:$4 sm:$0xff]  }
  0xf0   :  { %1704 = vmatmul.mubr.bf16.vlgmr.msra.gmra.mxu1 %v3723_v6  ;;  %1729 = vmatpush2.bf16.msra.mxu0 %v3267_v52  ;;  %v3288_v6 = vld [vmem:[#allocation5 + $0x488] ss:$16 sps:$4 sm:$0xff]  }
  0xf1   :  { %1754 = vmatpush1.bf16.msra.mxu1 %v3270_v53  ;;  %1730 = vmatprep.subr.bf16.mxu0 %v3275_v54  ;;  %v3365_v52 = vld [vmem:[#allocation8 + $0x74] ss:$8 sps:$4 sm:$0xff]   ;;  %v3363_v53 = vld [vmem:[#allocation8 + $0x70] ss:$8 sps:$4 sm:$0xff]   ;;  %v3368_v54 = vld [vmem:[#allocation8 + $0x64] ss:$8 sps:$4 sm:$0xff]  }
  0xf2   :  { %1755 = vmatprep.subr.bf16.mxu1 %v3278_v55  ;;  %1785 = vmatprep.mubr.bf16.mxu1 %v3734_v35  ;;  %v3297_v35 = vld [vmem:[#allocation5 + $0x348] ss:$16 sps:$4 sm:$0xff]   ;;  %v3366_v55 = vld [vmem:[#allocation8 + $0x60] ss:$8 sps:$4 sm:$0xff]  }
  0xf4   :  { %1731 = vmatpush2.bf16.msra.mxu0 %v3273_v56  ;;  %v3371_v56 = vld [vmem:[#allocation8 + $0x54] ss:$8 sps:$4 sm:$0xff]  }
  0xf5   :  { %1756 = vmatpush1.bf16.msra.mxu1 %v3276_v57  ;;  %1732 = vmatprep.subr.bf16.mxu0 %v3281_v58  ;;  %v3369_v57 = vld [vmem:[#allocation8 + $0x50] ss:$8 sps:$4 sm:$0xff]   ;;  %v3374_v58 = vld [vmem:[#allocation8 + $0x44] ss:$8 sps:$4 sm:$0xff]  }
  0xf6   :  { %1757 = vmatprep.subr.bf16.mxu1 %v3284_v59  ;;  %v3411_v59 = vld [vmem:[#allocation8 + $0x170] ss:$8 sps:$4 sm:$0xff]  }
  0xf8   :  { %1733 = vmatpush2.bf16.msra.mxu0 %v3279_v60  ;;  %v3413_v60 = vld [vmem:[#allocation8 + $0x174] ss:$8 sps:$4 sm:$0xff]  }
  0xf9   :  { %1758 = vmatpush1.bf16.msra.mxu1 %v3282_v61  ;;  %1734 = vmatprep.subr.bf16.mxu0 %v3287_v62  ;;  %v3416_v61 = vld [vmem:[#allocation8 + $0x164] ss:$8 sps:$4 sm:$0xff]   ;;  %v3372_v62 = vld [vmem:[#allocation8 + $0x40] ss:$8 sps:$4 sm:$0xff]  }
  0xfa   :  { %1759 = vmatprep.subr.bf16.mxu1 %v3290_v47  ;;  %v3414_v47 = vld [vmem:[#allocation8 + $0x160] ss:$8 sps:$4 sm:$0xff]  }
  0xfc   :  { %1735 = vmatpush2.bf16.msra.mxu0 %v3285_v63  ;;  %v3375_v63 = vld [vmem:[#allocation8 + $0x30] ss:$8 sps:$4 sm:$0xff]  }
  0xfd   :  { %1760 = vmatpush1.bf16.msra.mxu1 %v3288_v6  ;;  %1736 = vmatprep.subr.bf16.mxu0 %v3293_v0  ;;  %v3417_v6 = vld [vmem:[#allocation8 + $0x150] ss:$8 sps:$4 sm:$0xff]   ;;  %v3380_v0 = vld [vmem:[#allocation8 + $0x24] ss:$8 sps:$4 sm:$0xff]  }
  0xfe   :  { %1761 = vmatprep.subr.bf16.mxu1 %v3296_v1  ;;  %v3422_v1 = vld [vmem:[#allocation8 + $0x144] ss:$8 sps:$4 sm:$0xff]  }
 0x100   :  { %1737 = vmatpush2.bf16.msra.mxu0 %v3291_v2  ;;  %v3378_v2 = vld [vmem:[#allocation8 + $0x20] ss:$8 sps:$4 sm:$0xff]  }
 0x101   :  { %1762 = vmatpush1.bf16.msra.mxu1 %v3294_v3  ;;  %1738 = vmatprep.subr.bf16.mxu0 %v3299_v4  ;;  %v3420_v3 = vld [vmem:[#allocation8 + $0x140] ss:$8 sps:$4 sm:$0xff]   ;;  %v3383_v4 = vld [vmem:[#allocation8 + $0x14] ss:$8 sps:$4 sm:$0xff]  }
 0x102   :  { %1763 = vmatprep.subr.bf16.mxu1 %v3302_v5  ;;  %v3425_v5 = vld [vmem:[#allocation8 + $0x134] ss:$8 sps:$4 sm:$0xff]  }
 0x104   :  { %1739 = vmatpush2.bf16.msra.mxu0 %v3297_v35  ;;  %v3381_v35 = vld [vmem:[#allocation8 + $0x10] ss:$8 sps:$4 sm:$0xff]  }
 0x105   :  { %1764 = vmatpush1.bf16.msra.mxu1 %v3300_v8  ;;  %1740 = vmatprep.subr.bf16.mxu0 %v3305_v9  ;;  %v3423_v8 = vld [vmem:[#allocation8 + $0x130] ss:$8 sps:$4 sm:$0xff]   ;;  %v3386_v9 = vld [vmem:[#allocation8 + $0x4] ss:$8 sps:$4 sm:$0xff]  }
 0x106   :  { %1765 = vmatprep.subr.bf16.mxu1 %v3308_v10  ;;  %v3384_v10 = vld [vmem:[#allocation8] ss:$8 sps:$4 sm:$0xff]  }
 0x108   :  { %1741 = vmatpush2.bf16.msra.mxu0 %v3303_v11  ;;  %v3389_v11 = vld [vmem:[#allocation8 + $0xf4] ss:$8 sps:$4 sm:$0xff]  }
 0x109   :  { %1766 = vmatpush1.bf16.msra.mxu1 %v3306_v12  ;;  %1742 = vmatprep.subr.bf16.mxu0 %v3311_v13  ;;  %v3387_v12 = vld [vmem:[#allocation8 + $0xf0] ss:$8 sps:$4 sm:$0xff]   ;;  %v3392_v13 = vld [vmem:[#allocation8 + $0xe4] ss:$8 sps:$4 sm:$0xff]  }
 0x10a   :  { %1767 = vmatprep.subr.bf16.mxu1 %v3314_v14  ;;  %v3428_v14 = vld [vmem:[#allocation8 + $0x124] ss:$8 sps:$4 sm:$0xff]  }
 0x10c   :  { %1743 = vmatpush2.bf16.msra.mxu0 %v3309_v17  ;;  %v3426_v17 = vld [vmem:[#allocation8 + $0x120] ss:$8 sps:$4 sm:$0xff]  }
 0x10d   :  { %1768 = vmatpush1.bf16.msra.mxu1 %v3312_v18  ;;  %1794 = vmatprep.subr.bf16.mxu0 %v3320_v20  ;;  %v3390_v20 = vld [vmem:[#allocation8 + $0xe0] ss:$8 sps:$4 sm:$0xff]  }
 0x10e   :  { %1769 = vmatprep.subr.bf16.mxu1 %v3317_v19 }
 0x10f   :  { %1745 = vmatmul.mubr.bf16.vlgmr.msra.gmra.mxu0 %v3725_v7  ;;  %v3336_v7 = vld [vmem:[#allocation5 + $0x688] ss:$16 sps:$4 sm:$0xff]  }
 0x110   :  { %1795 = vmatpush1.bf16.msra.mxu0 %v3318_v22  ;;  %1826 = vmatprep.mubr.bf16.mxu0 %v3645_v16  ;;  %v3342_v16 = vld [vmem:[#allocation5 + $0x668] ss:$16 sps:$4 sm:$0xff]  }
 0x111   :  { %1770 = vmatpush2.bf16.msra.mxu1 %v3315_v21  ;;  %1796 = vmatprep.subr.bf16.mxu0 %v3326_v24  ;;  %v3431_v24 = vld [vmem:[#allocation8 + $0x114] ss:$8 sps:$4 sm:$0xff]  }
 0x112   :  { %1771 = vmatprep.subr.bf16.mxu1 %v3323_v23  ;;  %v3395_v23 = vld [vmem:[#allocation8 + $0xd4] ss:$8 sps:$4 sm:$0xff]  }
 0x114   :  { %1797 = vmatpush1.bf16.msra.mxu0 %v3324_v26 }
 0x115   :  { %1772 = vmatpush2.bf16.msra.mxu1 %v3321_v25  ;;  %1798 = vmatprep.subr.bf16.mxu0 %v3332_v28  ;;  %v3429_v25 = vld [vmem:[#allocation8 + $0x110] ss:$8 sps:$4 sm:$0xff]  }
 0x116   :  { %1773 = vmatprep.subr.bf16.mxu1 %v3329_v27  ;;  %v3393_v28 = vld [vmem:[#allocation8 + $0xd0] ss:$8 sps:$4 sm:$0xff]  }
 0x118   :  { %1799 = vmatpush1.bf16.msra.mxu0 %v3330_v30 }
 0x119   :  { %1774 = vmatpush2.bf16.msra.mxu1 %v3327_v29  ;;  %1800 = vmatprep.subr.bf16.mxu0 %v3338_v32  ;;  %v3432_v32 = vld [vmem:[#allocation8 + $0x100] ss:$8 sps:$4 sm:$0xff]  }
 0x11a   :  { %1775 = vmatprep.subr.bf16.mxu1 %v3335_v31  ;;  %v3398_v31 = vld [vmem:[#allocation8 + $0xc4] ss:$8 sps:$4 sm:$0xff]  }
 0x11c   :  { %1801 = vmatpush1.bf16.msra.mxu0 %v3336_v7  ;;  %v3437_v7 = vld [vmem:[#allocation8 + $0x1f4] ss:$8 sps:$4 sm:$0xff]  }
 0x11d   :  { %1776 = vmatpush2.bf16.msra.mxu1 %v3333_v33  ;;  %1802 = vmatprep.subr.bf16.mxu0 %v3344_v34  ;;  %v3434_v33 = vld [vmem:[#allocation8 + $0x104] ss:$8 sps:$4 sm:$0xff]   ;;  %v3435_v34 = vld [vmem:[#allocation8 + $0x1f0] ss:$8 sps:$4 sm:$0xff]  }
 0x11e   :  { %1777 = vmatprep.subr.bf16.mxu1 %v3341_v51  ;;  %v3396_v51 = vld [vmem:[#allocation8 + $0xc0] ss:$8 sps:$4 sm:$0xff]  }
 0x120   :  { %1803 = vmatpush1.bf16.msra.mxu0 %v3342_v16  ;;  %v3440_v16 = vld [vmem:[#allocation8 + $0x1e4] ss:$8 sps:$4 sm:$0xff]  }
 0x121   :  { %1778 = vmatpush2.bf16.msra.mxu1 %v3339_v36  ;;  %1804 = vmatprep.subr.bf16.mxu0 %v3350_v38  ;;  %v3401_v36 = vld [vmem:[#allocation8 + $0xb4] ss:$8 sps:$4 sm:$0xff]   ;;  %v3438_v38 = vld [vmem:[#allocation8 + $0x1e0] ss:$8 sps:$4 sm:$0xff]  }
 0x122   :  { %1779 = vmatprep.subr.bf16.mxu1 %v3347_v37  ;;  %v3399_v37 = vld [vmem:[#allocation8 + $0xb0] ss:$8 sps:$4 sm:$0xff]  }
 0x124   :  { %1805 = vmatpush1.bf16.msra.mxu0 %v3348_v40  ;;  %v3443_v40 = vld [vmem:[#allocation8 + $0x1d4] ss:$8 sps:$4 sm:$0xff]  }
 0x125   :  { %1780 = vmatpush2.bf16.msra.mxu1 %v3345_v39  ;;  %1806 = vmatprep.subr.bf16.mxu0 %v3356_v42  ;;  %v3404_v39 = vld [vmem:[#allocation8 + $0xa4] ss:$8 sps:$4 sm:$0xff]   ;;  %v3441_v42 = vld [vmem:[#allocation8 + $0x1d0] ss:$8 sps:$4 sm:$0xff]  }
 0x126   :  { %1781 = vmatprep.subr.bf16.mxu1 %v3353_v41  ;;  %v3402_v41 = vld [vmem:[#allocation8 + $0xa0] ss:$8 sps:$4 sm:$0xff]  }
 0x128   :  { %1807 = vmatpush1.bf16.msra.mxu0 %v3354_v45  ;;  %v3446_v45 = vld [vmem:[#allocation8 + $0x1c4] ss:$8 sps:$4 sm:$0xff]  }
 0x129   :  { %1782 = vmatpush2.bf16.msra.mxu1 %v3351_v43  ;;  %1808 = vmatprep.subr.bf16.mxu0 %v3362_v48  ;;  %v3407_v43 = vld [vmem:[#allocation8 + $0x94] ss:$8 sps:$4 sm:$0xff]   ;;  %v3444_v48 = vld [vmem:[#allocation8 + $0x1c0] ss:$8 sps:$4 sm:$0xff]  }
 0x12a   :  { %1783 = vmatprep.subr.bf16.mxu1 %v3359_v46  ;;  %v3405_v46 = vld [vmem:[#allocation8 + $0x90] ss:$8 sps:$4 sm:$0xff]  }
 0x12c   :  { %1809 = vmatpush1.bf16.msra.mxu0 %v3360_v50  ;;  %v3449_v50 = vld [vmem:[#allocation8 + $0x1b4] ss:$8 sps:$4 sm:$0xff]  }
 0x12d   :  { %1784 = vmatpush2.bf16.msra.mxu1 %v3357_v49  ;;  %2239 = vmatprep.subr.bf16.mxu0 %v3365_v52  ;;  %v3410_v49 = vld [vmem:[#allocation8 + $0x84] ss:$8 sps:$4 sm:$0xff]   ;;  %v3408_v52 = vld [vmem:[#allocation8 + $0x80] ss:$8 sps:$4 sm:$0xff]  }
 0x12e   :  { %2280 = vmatprep.subr.bf16.mxu1 %v3413_v60 }
 0x12f   :  { %1827 = vmatmul.mubr.bf16.vlgmr.msra.gmra.mxu0 %v3737_v44  ;;  %v3419_v44 = vld [vmem:[#allocation8 + $0x154] ss:$8 sps:$4 sm:$0xff]  }
 0x130   :  { %1786 = vmatmul.mubr.bf16.vlgmr.msra.gmra.mxu1 %v3743_v15  ;;  %2240 = vmatpush1.bf16.msra.mxu0 %v3363_v53  ;;  %v3377_v15 = vld [vmem:[#allocation8 + $0x34] ss:$8 sps:$4 sm:$0xff]   ;;  %v3447_v53 = vld [vmem:[#allocation8 + $0x1b0] ss:$8 sps:$4 sm:$0xff]  }
 0x131   :  { %2241 = vmatprep.subr.bf16.mxu0 %v3368_v54  ;;  %2281 = vmatpush1.bf16.msra.mxu1 %v3411_v59  ;;  %v3452_v54 = vld [vmem:[#allocation8 + $0x1a4] ss:$8 sps:$4 sm:$0xff]   ;;  %v3453_v59 = vld [vmem:[#allocation8 + $0x190] ss:$8 sps:$4 sm:$0xff]  }
 0x132   :  { %2282 = vmatprep.subr.bf16.mxu1 %v3416_v61 }
 0x134   :  { %2242 = vmatpush1.bf16.msra.mxu0 %v3366_v55  ;;  %v3450_v55 = vld [vmem:[#allocation8 + $0x1a0] ss:$8 sps:$4 sm:$0xff]  }
 0x135   :  { %2243 = vmatprep.subr.bf16.mxu0 %v3371_v56  ;;  %2283 = vmatpush1.bf16.msra.mxu1 %v3414_v47  ;;  %v3456_v47 = vld [vmem:[#allocation8 + $0x180] ss:$8 sps:$4 sm:$0xff]  }
 0x136   :  { %2284 = vmatprep.subr.bf16.mxu1 %v3419_v44 }
 0x138   :  { %2244 = vmatpush1.bf16.msra.mxu0 %v3369_v57 }
 0x139   :  { %2245 = vmatprep.subr.bf16.mxu0 %v3374_v58  ;;  %2285 = vmatpush1.bf16.msra.mxu1 %v3417_v6  ;;  %v3455_v58 = vld [vmem:[#allocation8 + $0x194] ss:$8 sps:$4 sm:$0xff]  }
 0x13a   :  { %2286 = vmatprep.subr.bf16.mxu1 %v3422_v1  ;;  %v340_v6 = vld [vmem:[#allocation7] sm:$0xf] }
 0x13c   :  { %2246 = vmatpush1.bf16.msra.mxu0 %v3372_v62  ;;  %v3458_v62 = vld [vmem:[#allocation8 + $0x184] ss:$8 sps:$4 sm:$0xff]  }
 0x13d   :  { %2247 = vmatprep.subr.bf16.mxu0 %v3377_v15  ;;  %2287 = vmatpush1.bf16.msra.mxu1 %v3420_v3  ;;  %v342_v15 = vlaneseq }
 0x13e   :  { %2288 = vmatprep.subr.bf16.mxu1 %v3425_v5 }
 0x13f   :  { %v3761_v44 = vshrl.u32 %v342_v15, 7 }
 0x140   :  { %2248 = vmatpush1.bf16.msra.mxu0 %v3375_v63 }
 0x141   :  { %2249 = vmatprep.subr.bf16.mxu0 %v3380_v0  ;;  %2289 = vmatpush1.bf16.msra.mxu1 %v3423_v8  ;;  %v344_v63 = vsub.s32 0, %v3761_v44  ;;  %v348_v0 = vsub.s32 1, %v3761_v44 }
 0x142   :  { %2290 = vmatprep.subr.bf16.mxu1 %v3428_v14 }
 0x143   :  { %v345_v1 = vrot.slane %v340_v6, %v344_v63 }
 0x144   :  { %2250 = vmatpush1.bf16.msra.mxu0 %v3378_v2  ;;  %v349_v2 = vrot.slane %v340_v6, %v348_v0 }
 0x145   :  { %2251 = vmatprep.subr.bf16.mxu0 %v3383_v4  ;;  %2291 = vmatpush1.bf16.msra.mxu1 %v3426_v17 }
 0x146   :  { %2292 = vmatprep.subr.bf16.mxu1 %v3431_v24 }
 0x148   :  { %2252 = vmatpush1.bf16.msra.mxu0 %v3381_v35 }
 0x149   :  { %2253 = vmatprep.subr.bf16.mxu0 %v3386_v9  ;;  %2293 = vmatpush1.bf16.msra.mxu1 %v3429_v25 }
 0x14a   :  { %2294 = vmatprep.subr.bf16.mxu1 %v3434_v33  ;;  %v352_v33 = vsub.s32 2, %v3761_v44 }
 0x14c   :  { %2254 = vmatpush1.bf16.msra.mxu0 %v3384_v10 }
 0x14d   :  { %2255 = vmatprep.subr.bf16.mxu0 %v3389_v11  ;;  %2295 = vmatpush1.bf16.msra.mxu1 %v3432_v32  ;;  %v3461_v32 = vld [vmem:[#allocation10 + $0x70] sm:$0xff]  }
 0x14e   :  { %2296 = vmatprep.subr.bf16.mxu1 %v3437_v7  ;;  %v3462_v7 = vld [vmem:[#allocation10 + $0x30] sm:$0xff]  }
 0x14f   :  { %v3753_v18 = vpop.f32.mrf.mxu0 }
 0x150   :  { %v3755_v19 = vpop.f32.mrf.mxu1  ;;  %2256 = vmatpush2.bf16.msra.mxu0 %v3387_v12  ;;  %v1542_v3 = vadd.f32 %v3753_v18, %v345_v1 }
 0x151   :  { %v3757_v21 = vpop.f32.mrf.mxu0  ;;  %2257 = vmatprep.subr.bf16.mxu0 %v3392_v13  ;;  %2297 = vmatpush2.bf16.msra.mxu1 %v3435_v34  ;;  %v356_v34 = vsub.s32 3, %v3761_v44  ;;  %v3482_v44 = vld [vmem:[#allocation11] sm:$0xff]  }
 0x152   :  { %v3759_v22 = vpop.f32.mrf.mxu1  ;;  %2298 = vmatprep.subr.bf16.mxu1 %v3440_v16  ;;  %v1544_v4 = vadd.f32 %v3757_v21, %v349_v2  ;;  %v1583_v5 = vadd.f32 %v3755_v19, %v1542_v3  ;;  %v3464_v16 = vld [vmem:[#allocation10 + $0x28] sm:$0xff]  }
 0x153   :  { %v1545_v26 = vpop.f32.mrf.mxu0  ;;  %v3471_v2 = vld [vmem:[#allocation10 + $0x48] sm:$0xff]  }
 0x154   :  { %v1586_v27 = vpop.f32.mrf.mxu1  ;;  %2258 = vmatpush2.bf16.msra.mxu0 %v3390_v20  ;;  %v1585_v8 = vadd.f32 %v3759_v22, %v1544_v4  ;;  %v3472_v3 = vld [vmem:[#allocation10 + $0x8] sm:$0xff]   ;;  %v3473_v4 = vld [vmem:[#allocation10 + $0x40] sm:$0xff]  }
 0x155   :  { %v1546_v29 = vpop.f32.mrf.mxu0  ;;  %2259 = vmatprep.subr.bf16.mxu0 %v3395_v23  ;;  %2299 = vmatpush2.bf16.msra.mxu1 %v3438_v38  ;;  %v357_v38 = vrot.slane %v340_v6, %v356_v34 }
 0x156   :  { %v1587_v30 = vpop.f32.mrf.mxu1  ;;  %2300 = vmatprep.subr.bf16.mxu1 %v3443_v40  ;;  %v3466_v40 = vld [vmem:[#allocation10 + $0x20] sm:$0xff]  }
 0x157   :  { %v3459_v30 = vld [vmem:[#allocation10 + $0x78] sm:$0xff]  }
 0x158   :  { %2260 = vmatpush2.bf16.msra.mxu0 %v3393_v28 }
 0x159   :  { %2261 = vmatprep.subr.bf16.mxu0 %v3398_v31  ;;  %2301 = vmatpush2.bf16.msra.mxu1 %v3441_v42  ;;  %v3460_v31 = vld [vmem:[#allocation10 + $0x38] sm:$0xff]  }
 0x15a   :  { %2302 = vmatprep.subr.bf16.mxu1 %v3446_v45 }
 0x15c   :  { %2262 = vmatpush2.bf16.msra.mxu0 %v3396_v51  ;;  %v3463_v51 = vld [vmem:[#allocation10 + $0x68] sm:$0xff]  }
 0x15d   :  { %2263 = vmatprep.subr.bf16.mxu0 %v3401_v36  ;;  %2303 = vmatpush2.bf16.msra.mxu1 %v3444_v48  ;;  %v353_v36 = vrot.slane %v340_v6, %v352_v33 }
 0x15e   :  { %2304 = vmatprep.subr.bf16.mxu1 %v3449_v50  ;;  %v3468_v50 = vld [vmem:[#allocation10 + $0x18] sm:$0xff]  }
 0x160   :  { %2264 = vmatpush2.bf16.msra.mxu0 %v3399_v37  ;;  %v3465_v37 = vld [vmem:[#allocation10 + $0x60] sm:$0xff]  }
 0x161   :  { %2265 = vmatprep.subr.bf16.mxu0 %v3404_v39  ;;  %2305 = vmatpush2.bf16.msra.mxu1 %v3447_v53 }
 0x162   :  { %2306 = vmatprep.subr.bf16.mxu1 %v3452_v54  ;;  %v3469_v54 = vld [vmem:[#allocation10 + $0x50] sm:$0xff]  }
 0x164   :  { %2266 = vmatpush2.bf16.msra.mxu0 %v3402_v41  ;;  %v3467_v41 = vld [vmem:[#allocation10 + $0x58] sm:$0xff]  }
 0x165   :  { %2267 = vmatprep.subr.bf16.mxu0 %v3407_v43  ;;  %2307 = vmatpush2.bf16.msra.mxu1 %v3450_v55 }
 0x166   :  { %2308 = vmatprep.subr.bf16.mxu1 %v3455_v58 }
 0x168   :  { %2268 = vmatpush2.bf16.msra.mxu0 %v3405_v46 }
 0x169   :  { %2269 = vmatprep.subr.bf16.mxu0 %v3410_v49  ;;  %2309 = vmatpush2.bf16.msra.mxu1 %v3453_v59 }
 0x16a   :  { %2310 = vmatprep.subr.bf16.mxu1 %v3458_v62 }
 0x16c   :  { %2270 = vmatpush2.bf16.msra.mxu0 %v3408_v52 }
 0x16d   :  { %2311 = vmatpush2.bf16.msra.mxu1 %v3456_v47  ;;  %2953 = vmatprep.subr.bf16.mxu0 %v3459_v30 }
 0x170   :  { %v1664_v56 = vpop.f32.mrf.mxu1 }
 0x172   :  { %v1666_v57 = vpop.f32.mrf.mxu1 }
 0x174   :  { %v1668_v60 = vpop.f32.mrf.mxu1 }
 0x175   :  { %v3470_v60 = vld [vmem:[#allocation10 + $0x10] sm:$0xff]  }
 0x176   :  { %v1669_v61 = vpop.f32.mrf.mxu1 }
 0x18f   :  { %v1623_v35 = vpop.f32.mrf.mxu0 }
 0x190   :  { %v1624_v9 = vadd.f32 %v1623_v35, %v1583_v5  ;;  %v3474_v5 = vld [vmem:[#allocation10] sm:$0xff]   ;;  %v3475_v35 = vld [vmem:[#allocation11 + $0x38] sm:$0xff]  }
 0x191   :  { %v1625_v10 = vpop.f32.mrf.mxu0 }
 0x192   :  { %v1665_v11 = vadd.f32 %v1664_v56, %v1624_v9  ;;  %v1626_v12 = vadd.f32 %v1625_v10, %v1585_v8  ;;  %v3646_v8 = vmov 0.0   ;;  %v3476_v9 = vld [vmem:[#allocation11 + $0x30] sm:$0xff]   ;;  %v3477_v10 = vld [vmem:[#allocation11 + $0x28] sm:$0xff]  }
 0x193   :  { %v1627_v13 = vpop.f32.mrf.mxu0  ;;  %2984 = vmatprep.subr.bf16.mxu1 %v3646_v8 }
 0x194   :  { %v1667_v14 = vadd.f32 %v1666_v57, %v1626_v12  ;;  %v1835_v17 = vmax.f32 %v1665_v11, 0.0  ;;  %v3478_v11 = vld [vmem:[#allocation11 + $0x20] sm:$0xff]   ;;  %v3479_v12 = vld [vmem:[#allocation11 + $0x18] sm:$0xff]  }
 0x195   :  { %v1628_v20 = vpop.f32.mrf.mxu0 }
 0x196   :  { %v1836_v23 = vmax.f32 %v1667_v14, 0.0  ;;  %v1839_v25 = vpack.c.bf16 %v1835_v17, %v1835_v17 }
 0x198   :  { %v1840_v24 = vpack.c.bf16 %v1836_v23, %v1836_v23  ;;  %v1907_v23 = vld [vmem:[%s3795_s4] sm:$0x3] }
 0x19a   :  { %2271 = vmatprep.mubr.bf16.mxu0 %v1840_v24  ;;  %v1912_v24 = vrot.slane %v1907_v23, %v344_v63  ;;  %v3481_v63 = vld [vmem:[#allocation11 + $0x8] sm:$0xff]  }
 0x19b   :  { %2272 = vmatmul.mubr.bf16.vlgmr.msra.gmra.mxu0 %v1839_v25  ;;  %v1916_v25 = vrot.slane %v1907_v23, %v348_v0 }
 0x19c   :  { %2954 = vmatpush3.bf16.msra.mxu0 %v3460_v31 }
 0x19d   :  { %2955 = vmatprep.subr.bf16.mxu0 %v3461_v32 }
 0x1a0   :  { %2956 = vmatpush3.bf16.msra.mxu0 %v3462_v7  ;;  %v3480_v7 = vld [vmem:[#allocation11 + $0x10] sm:$0xff]  }
 0x1a1   :  { %2957 = vmatprep.subr.bf16.mxu0 %v3463_v51  ;;  %v2927_v51 = vld [vmem:[%s3797_s6] ss:$0 sm:$0xff]  ;;  %s3603_s6 = scalar_lea.vmem %s2621_s24, 128 }
 0x1a2   :  { %p3604_p2 = scmp.ne.s32.totalorder %s2621_s24, %s3603_s6  ;;  %p3609_p4 = scmp.lt.s32.totalorder %s3603_s6, %s3603_s6 }
 0x1a4   :  { %2958 = vmatpush3.bf16.msra.mxu0 %v3464_v16  ;;  %p3610_p5 = por %p3609_p4, %p3608_p3 }
 0x1a5   :  { %2959 = vmatprep.subr.bf16.mxu0 %v3465_v37 }
 0x1a6   :  { %p3611_p6 = pnand %p3610_p5, %p3604_p2 }
 0x1a8   :  { %2960 = vmatpush3.bf16.msra.mxu0 %v3466_v40 }
 0x1a9   :  { %2961 = vmatprep.subr.bf16.mxu0 %v3467_v41  ;;  %v2944_v41 = vld [vmem:[%s3799_s8] ss:$0 sm:$0xff] }
 0x1ac   :  { %2962 = vmatpush3.bf16.msra.mxu0 %v3468_v50 }
 0x1ad   :  { %2963 = vmatprep.subr.bf16.mxu0 %v3469_v54 }
 0x1b0   :  { %v1705_v18 = vpop.f32.mrf.mxu1  ;;  %2964 = vmatpush3.bf16.msra.mxu0 %v3470_v60 }
 0x1b1   :  { %v1706_v39 = vadd.f32 %v1705_v18, %v353_v36  ;;  %2965 = vmatprep.subr.bf16.mxu0 %v3471_v2 }
 0x1b2   :  { %v1707_v21 = vpop.f32.mrf.mxu1 }
 0x1b3   :  { %v1708_v42 = vadd.f32 %v1707_v21, %v357_v38 }
 0x1b4   :  { %v1709_v26 = vpop.f32.mrf.mxu1  ;;  %2966 = vmatpush3.bf16.msra.mxu0 %v3472_v3 }
 0x1b5   :  { %2967 = vmatprep.subr.bf16.mxu0 %v3473_v4 }
 0x1b6   :  { %v1710_v19 = vpop.f32.mrf.mxu1 }
 0x1b8   :  { %2968 = vmatpush3.bf16.msra.mxu0 %v3474_v5 }
 0x1cf   :  { %v1746_v27 = vpop.f32.mrf.mxu0 }
 0x1d0   :  { %v1747_v43 = vadd.f32 %v1746_v27, %v1706_v39 }
 0x1d1   :  { %v1748_v28 = vpop.f32.mrf.mxu0 }
 0x1d2   :  { %v1749_v48 = vadd.f32 %v1748_v28, %v1708_v42 }
 0x1d3   :  { %v1750_v22 = vpop.f32.mrf.mxu0 }
 0x1d5   :  { %v1751_v29 = vpop.f32.mrf.mxu0 }
 0x1ef   :  { %v1828_v46 = vpop.f32.mrf.mxu0 }
 0x1f0   :  { %v1787_v45 = vpop.f32.mrf.mxu1 }
 0x1f1   :  { %v1788_v49 = vadd.f32 %v1787_v45, %v1747_v43  ;;  %v1830_v53 = vpop.f32.mrf.mxu0 }
 0x1f2   :  { %v1789_v52 = vpop.f32.mrf.mxu1 }
 0x1f3   :  { %v1829_v55 = vadd.f32 %v1828_v46, %v1788_v49  ;;  %v1790_v56 = vadd.f32 %v1789_v52, %v1749_v48  ;;  %v1832_v58 = vpop.f32.mrf.mxu0 }
 0x1f4   :  { %v1791_v57 = vpop.f32.mrf.mxu1 }
 0x1f5   :  { %v1831_v59 = vadd.f32 %v1830_v53, %v1790_v56  ;;  %v1837_v61 = vmax.f32 %v1829_v55, 0.0  ;;  %v1833_v47 = vpop.f32.mrf.mxu0 }
 0x1f6   :  { %v1792_v62 = vpop.f32.mrf.mxu1 }
 0x1f7   :  { %v1838_v15 = vmax.f32 %v1831_v59, 0.0  ;;  %v1841_v1 = vpack.c.bf16 %v1837_v61, %v1837_v61 }
 0x1f9   :  { %v1842_v6 = vpack.c.bf16 %v1838_v15, %v1838_v15 }
 0x1fb   :  { %2312 = vmatprep.mubr.bf16.mxu1 %v1842_v6 }
 0x1fc   :  { %2313 = vmatmul.mubr.bf16.vlgmr.msra.gmra.mxu1 %v1841_v1 }
 0x1fd   :  { %2985 = vmatpush3.bf16.msra.mxu1 %v3475_v35  ;;  %3000 = vmatprep.mubr.msk.bf16.mxu1 %vm3647_vm0, %v3646_v8 }
 0x1fe   :  { %2986 = vmatprep.subr.bf16.mxu1 %v3646_v8 }
 0x201   :  { %2987 = vmatpush3.bf16.msra.mxu1 %v3476_v9 }
 0x202   :  { %2988 = vmatprep.subr.bf16.mxu1 %v3646_v8 }
 0x205   :  { %2989 = vmatpush3.bf16.msra.mxu1 %v3477_v10 }
 0x206   :  { %2990 = vmatprep.subr.bf16.mxu1 %v3646_v8 }
 0x209   :  { %2991 = vmatpush3.bf16.msra.mxu1 %v3478_v11 }
 0x20a   :  { %2992 = vmatprep.subr.bf16.mxu1 %v3646_v8 }
 0x20d   :  { %2993 = vmatpush3.bf16.msra.mxu1 %v3479_v12 }
 0x20e   :  { %2994 = vmatprep.subr.bf16.mxu1 %v3646_v8 }
 0x211   :  { %2995 = vmatpush3.bf16.msra.mxu1 %v3480_v7 }
 0x212   :  { %2996 = vmatprep.subr.bf16.mxu1 %v3646_v8 }
 0x215   :  { %2997 = vmatpush3.bf16.msra.mxu1 %v3481_v63 }
 0x216   :  { %2998 = vmatprep.subr.bf16.mxu1 %v3646_v8 }
 0x219   :  { %2999 = vmatpush3.bf16.msra.mxu1 %v3482_v44 }
 0x25b   :  { %v2273_v13 = vpop.f32.mrf.mxu0 }
 0x25c   :  { %v2274_v18 = vadd.f32 %v2273_v13, %v1912_v24 }
 0x25d   :  { %v2275_v14 = vpop.f32.mrf.mxu0 }
 0x25e   :  { %v2276_v26 = vadd.f32 %v2275_v14, %v1916_v25 }
 0x25f   :  { %v2277_v17 = vpop.f32.mrf.mxu0 }
 0x261   :  { %v2278_v20 = vpop.f32.mrf.mxu0 }
 0x2bc   :  { %v2314_v21 = vpop.f32.mrf.mxu1 }
 0x2bd   :  { %v2315_v19 = vadd.f32 %v2314_v21, %v2274_v18 }
 0x2be   :  { %v2316_v27 = vpop.f32.mrf.mxu1 }
 0x2bf   :  { %v2317_v28 = vadd.f32 %v2316_v27, %v2276_v26  ;;  %v2321_v22 = vmax.f32 %v2315_v19, 0.0 }
 0x2c0   :  { %v2318_v29 = vpop.f32.mrf.mxu1 }
 0x2c1   :  { %v2322_v30 = vmax.f32 %v2317_v28, 0.0  ;;  %v2323_v33 = vpack.c.bf16 %v2321_v22, %v2321_v22 }
 0x2c2   :  { %v2319_v31 = vpop.f32.mrf.mxu1 }
 0x2c3   :  { %v2324_v32 = vpack.c.bf16 %v2322_v30, %v2322_v30 }
 0x2c5   :  { %2492 = vmatprep.mubr.bf16.mxu0 %v2324_v32 }
 0x2c6   :  { %2493 = vmatmul.mubr.bf16.vlgmr.msra.gmra.mxu0 %v2323_v33 }
 0x386   :  { %v2969_v0 = vpop.f32.mrf.mxu0 }
 0x388   :  { %v2970_v34 = vpop.f32.mrf.mxu0 }
 0x389   :  { %v2971_v36 = vadd.f32 %v2970_v34, %v2969_v0 }
 0x38a   :  { %v2972_v16 = vpop.f32.mrf.mxu0 }
 0x38b   :  { %v2495_v37 = vadd.f32 %v2971_v36, %v2927_v51 }
 0x38c   :  { %v2973_v38 = vpop.f32.mrf.mxu0 }
 0x38d   :  { %v2500_v39 = vmax.f32 %v2495_v37, 0.0 }
 0x38f   :  { %v2501_v40 = vpack.c.bf16 %v2500_v39, %v2500_v39 }
 0x391   :  { %3001 = vmatmul.mubr.bf16.vlgmr.msra.gmra.mxu1 %v2501_v40 }
 0x451   :  { %v2607_v42 = vpop.f32.mrf.mxu1 }
 0x452   :  { %v2608_v43 = vadd.f32 %v2944_v41, %v2607_v42 }
 0x453   :  { %v3002_v45 = vpop.f32.mrf.mxu1 }
 0x454   :  { %2613 = vst [vmem:[#allocation13] sm:$0xff] %v2608_v43 }
 0x455   :  { %v2610_v46 = vpop.f32.mrf.mxu1 }
 0x456   :  { %3614 = shalt.err (!%p3611_p6)
}
 0x457   :  { %2623 = dma.vmem_to_hbm [thread:$0]  %s2621_s24, 128, %s3800_s9, [#allocation4]   ;;  %v3003_v48 = vpop.f32.mrf.mxu1 }
 0x458   :  { %3631 = dma.done.wait [#allocation4], 128  }
 0x459   :  { %3632 = vsyncadd [#allocation4], 4294967168 }
 0x45a   :  { %2627 = vsyncpa [#allocation3], 1 }
 0x45b   :  { %2628 = vsyncpa [#allocation6], 1 }
 0x45c   :  { %2629 = vsyncpa [#allocation9], 1 }
 0x45d   :  { %2630 = vsyncpa [#allocation12], 1 }
 0x45e   :  { %2631 = vsyncpa [#allocation4], 1 }

</bundles_post_ra>
